<compile_context>
chip_gen: v7x
topology: tpu7x:2x2x1
jax: 0.10.0
libtpu: 0.0.40
codegen_flags: <defaults>
</compile_context>

<pallas_src>
import functools

import jax
import jax.numpy as jnp
from jax.experimental import pallas as pl
from jax.experimental.pallas import tpu as pltpu


# --------------------------------------------------------------------------- #
# Kernel
# --------------------------------------------------------------------------- #
def _layernorm(x, gamma, beta, eps=1e-5):
    # x: (N, D) f32; gamma/beta: (1, D) f32.  Biased variance, eps=1e-5 (PyTorch).
    mean = jnp.mean(x, axis=-1, keepdims=True)
    var = jnp.mean((x - mean) ** 2, axis=-1, keepdims=True)
    return (x - mean) * jax.lax.rsqrt(var + eps) * gamma + beta


def perceiver_attention_kernel(
    x_ref, lat_ref,                       # (Bt, M, D), (Bt, L, D)  f32 activations
    g_m_ref, b_m_ref, g_l_ref, b_l_ref,   # (1, D) f32 LayerNorm affines
    wq_ref,                               # (D, H*dh)   MXU dtype, q-scale folded
    wkv_ref,                              # (D, 2*H*dh) MXU dtype
    wout_ref,                             # (H*dh, D)   MXU dtype
    o_ref,                                # (Bt, L, D)  f32 output
    kv_ref,                               # (Bt, M+L, D) VMEM scratch (MXU dtype)
    *, nheads, approx_softmax=True,
):
    Bt, M, D = x_ref.shape
    _, L, _ = lat_ref.shape
    H = nheads
    HD = wq_ref.shape[1]
    dh = HD // H
    T = M + L
    mxu_dtype = wq_ref.dtype
    f32 = jnp.float32

    # ---- LayerNorms in f32 on native-precision inputs (VPU), batch-flattened --
    x = x_ref[...].astype(f32).reshape(Bt * M, D)
    lat = lat_ref[...].astype(f32).reshape(Bt * L, D)
    xn = _layernorm(x, g_m_ref[...], b_m_ref[...])
    latn = _layernorm(lat, g_l_ref[...], b_l_ref[...])

    # ---- Stage [x_n ; lat_n] into one tile-aligned KV-input scratch -----------
    # Two sublane-aligned stores instead of a jnp.concatenate copy.
    kv_ref[:, :M, :] = xn.reshape(Bt, M, D).astype(mxu_dtype)
    kv_ref[:, M:, :] = latn.reshape(Bt, L, D).astype(mxu_dtype)
    kv_in = kv_ref[...].reshape(Bt * T, D)          # (Bt*T, D)  MXU dtype
    lat_n = latn.astype(mxu_dtype)                  # (Bt*L, D)  MXU dtype

    # ---- Fused, full-lane-width projections (2 matmuls total) -----------------
    q = jnp.dot(lat_n, wq_ref[...], preferred_element_type=f32)     # (Bt*L, H*dh)
    kv = jnp.dot(kv_in, wkv_ref[...], preferred_element_type=f32)   # (Bt*T, 2*H*dh)
    k = kv[:, :HD]
    v = kv[:, HD:]

    # ---- Split heads: (rows, H*dh) -> (H*Bt, seq, dh) --------------------------
    # One lane->sublane reshape + one lane-preserving transpose per tensor.
    def split_heads(t, seq):
        t = t.astype(mxu_dtype).reshape(Bt * seq, H, dh)
        t = jnp.transpose(t, (1, 0, 2))             # "mhd->hmd": lanes (dh) fixed
        return t.reshape(H * Bt, seq, dh)           # free leading-dim regroup

    qh = split_heads(q, L)                          # (G, L, dh), G = H*Bt
    kh = split_heads(k, T)                          # (G, T, dh)
    vh = split_heads(v, T)                          # (G, T, dh)

    # ---- One batched contraction + one wide softmax for all heads & batches ---
    sim = jnp.einsum("gid,gjd->gij", qh, kh, preferred_element_type=f32)  # (G, L, T)
    sim = sim - jnp.max(sim, axis=-1, keepdims=True)
    p = jnp.exp(sim)
    denom = jnp.sum(p, axis=-1, keepdims=True)
    if approx_softmax:
        attn = p * pl.reciprocal(denom, approx=True)   # EUP slot, ~1e-3 rel err
    else:
        attn = p / denom
    out = jnp.einsum("gij,gjd->gid", attn.astype(mxu_dtype), vh,
                     preferred_element_type=f32)                          # (G, L, dh)

    # ---- Merge heads and ONE full-depth (K = H*dh) output projection ----------
    out = out.reshape(H, Bt * L, dh)                 # free leading-dim regroup
    out = jnp.transpose(out, (1, 0, 2))              # "hmd->mhd"
    out = out.reshape(Bt * L, HD).astype(mxu_dtype)  # (Bt*L, H*dh), (h, d) order
    o = jnp.dot(out, wout_ref[...], preferred_element_type=f32)          # (Bt*L, D)
    o_ref[...] = o.reshape(Bt, L, D).astype(o_ref.dtype)


# --------------------------------------------------------------------------- #
# Parameter preparation (one-time)
# --------------------------------------------------------------------------- #
def prepare_perceiver_params(params, *, nheads, d_head, mxu_dtype=jnp.bfloat16):
    """Keep weights full lane width (no head-major padding), fold the q scaling
    (q / scale, scale = d_head**-0.5) into wq, cast MXU operands to `mxu_dtype`
    (bf16 default on ALL TPU generations — the MXU is native bf16 even on v5e),
    keep LayerNorm affines in f32."""
    wq, wkv, wout = params["wq"], params["wkv"], params["wout"]
    D, HD = wq.shape
    assert HD == nheads * d_head
    assert wkv.shape == (D, 2 * HD) and wout.shape == (HD, D)
    f32 = jnp.float32
    return {
        "g_m": params["g_m"].astype(f32).reshape(1, D),
        "b_m": params["b_m"].astype(f32).reshape(1, D),
        "g_l": params["g_l"].astype(f32).reshape(1, D),
        "b_l": params["b_l"].astype(f32).reshape(1, D),
        "wq": (wq * (float(d_head) ** 0.5)).astype(mxu_dtype),   # (D, H*dh), scale folded
        "wkv": wkv.astype(mxu_dtype),                            # (D, 2*H*dh)
        "wout": wout.astype(mxu_dtype),                          # (H*dh, D)
        "nheads": nheads,
    }


# --------------------------------------------------------------------------- #
# Batch-tile sizing (VMEM driven)
# --------------------------------------------------------------------------- #
def _pick_block_b(batch, n_media, n_latents, d_model, nheads, d_head,
                  *, mxu_itemsize=2, vmem_budget_bytes=40 * 1024 * 1024):
    """Pick the largest batch tile whose working set fits the VMEM budget,
    preferring >=2 grid steps (even count) so both v7x TensorCores get work."""
    M, L, D, H, dh = n_media, n_latents, d_model, nheads, d_head
    T = M + L
    HD = H * dh
    # Constant operands (weights + LN affines); double-buffered by the pipeline.
    const_bytes = 2 * ((D * HD + D * 2 * HD + HD * D) * mxu_itemsize + 4 * D * 4)
    # Rough per-batch-element footprint of one grid step.
    per_elem = (
        2 * (M * D * 4)                      # x tile (f32, double-buffered)
        + 2 * (L * D * 4)                    # latents tile
        + 2 * (L * D * 4)                    # output tile
        + T * D * mxu_itemsize               # kv staging scratch
        + (L + 2 * T) * HD * 4               # q / kv projection results (f32)
        + (L + 2 * T) * HD * mxu_itemsize    # head-split copies (MXU dtype)
        + 3 * H * L * T * 4                  # sim / p / attn (f32)
        + 2 * L * HD * 4                     # attention output + head merge
    )
    budget = max(vmem_budget_bytes - const_bytes, per_elem)
    divisors = [d for d in range(1, batch + 1) if batch % d == 0]
    fits = [d for d in divisors if d * per_elem <= budget] or [1]
    multi = [d for d in fits if batch // d >= 2]
    even = [d for d in multi if (batch // d) % 2 == 0]
    if even:
        return max(even)
    if multi:
        return max(multi)
    return max(fits)


# --------------------------------------------------------------------------- #
# Wrapper
# --------------------------------------------------------------------------- #
def perceiver_attention(x, latents, prep, *, block_b=None,
                        vmem_limit_bytes=48 * 1024 * 1024,
                        approx_softmax=True):
    """Fused PerceiverAttention forward.  `prep` comes from prepare_perceiver_params.
    Inputs are consumed in their native dtype (cast to f32 inside the kernel
    before LayerNorm) — no wrapper-side cast / extra HBM round trip."""
    B, M, D = x.shape
    _, L, _ = latents.shape
    H = prep["nheads"]
    HD = prep["wq"].shape[1]
    dh = HD // H
    T = M + L
    mxu_dtype = prep["wq"].dtype

    # TODO(synk): pad M / L to multiples of 8 (16 for bf16 packing) to support
    # arbitrary token counts instead of asserting.
    assert M % 8 == 0 and L % 8 == 0, "token counts must be multiples of 8 (sublane)"

    if block_b is None:
        block_b = _pick_block_b(
            B, M, L, D, H, dh,
            mxu_itemsize=jnp.dtype(mxu_dtype).itemsize,
            vmem_budget_bytes=max(vmem_limit_bytes - 8 * 1024 * 1024, 1 << 20))
    assert B % block_b == 0, "block_b must divide the batch"
    n_tiles = B // block_b

    def _const_spec(shape):
        return pl.BlockSpec(shape, lambda b: (0,) * len(shape))

    # TODO(synk): mark the constant specs pipeline_mode=pl.Buffered(1) once
    # verified on the target toolchain (saves one weight copy of VMEM on v7x).
    in_specs = [
        pl.BlockSpec((block_b, M, D), lambda b: (b, 0, 0)),   # x batch tile (f32)
        pl.BlockSpec((block_b, L, D), lambda b: (b, 0, 0)),   # latents batch tile (f32)
        _const_spec((1, D)), _const_spec((1, D)),             # norm_medias gamma/beta
        _const_spec((1, D)), _const_spec((1, D)),             # norm_latents gamma/beta
        _const_spec((D, HD)),                                 # wq  (full width, scale folded)
        _const_spec((D, 2 * HD)),                             # wkv (full width)
        _const_spec((HD, D)),                                 # wout
    ]

    kernel = functools.partial(perceiver_attention_kernel,
                               nheads=H, approx_softmax=approx_softmax)

    return pl.pallas_call(
        kernel,
        out_shape=jax.ShapeDtypeStruct((B, L, D), jnp.float32),
        grid_spec=pltpu.PrefetchScalarGridSpec(
            num_scalar_prefetch=0,
            grid=(n_tiles,),
            in_specs=in_specs,
            out_specs=pl.BlockSpec((block_b, L, D), lambda b: (b, 0, 0)),
            scratch_shapes=[pltpu.VMEM((block_b, T, D), mxu_dtype)],
        ),
        compiler_params=pltpu.CompilerParams(
            dimension_semantics=("parallel",),
            vmem_limit_bytes=vmem_limit_bytes,
        ),
    )(x, latents, prep["g_m"], prep["b_m"], prep["g_l"], prep["b_l"],
      prep["wq"], prep["wkv"], prep["wout"])


# --------------------------------------------------------------------------- #
# Pure-JAX reference (mirrors the PyTorch forward exactly)
# --------------------------------------------------------------------------- #
def perceiver_attention_ref(x, latents, params, *, nheads, d_head):
    in_dim = nheads * d_head

    def ln(t, g, b):
        m = jnp.mean(t, axis=-1, keepdims=True)
        v = jnp.mean((t - m) ** 2, axis=-1, keepdims=True)
        return (t - m) / jnp.sqrt(v + 1e-5) * g + b

    xn = ln(x, params["g_m"], params["b_m"])
    ln_lat = ln(latents, params["g_l"], params["b_l"])
    q = ln_lat @ params["wq"]
    kv_in = jnp.concatenate([xn, ln_lat], axis=-2)
    kv = kv_in @ params["wkv"]
    k, v = kv[..., :in_dim], kv[..., in_dim:]

    def to_heads(t):
        B, S, _ = t.shape
        return t.reshape(B, S, nheads, d_head).transpose(0, 2, 1, 3)

    q, k, v = to_heads(q), to_heads(k), to_heads(v)
    q = q / (d_head ** -0.5)                      # matches `q = q / self.scale`
    sim = jnp.einsum("bhid,bhjd->bhij", q, k)
    sim = sim - jnp.max(sim, axis=-1, keepdims=True)
    attn = jax.nn.softmax(sim, axis=-1)
    out = jnp.einsum("bhij,bhjd->bhid", attn, v)
    B, H, L, dh = out.shape
    out = out.transpose(0, 2, 1, 3).reshape(B, L, H * dh)
    return out @ params["wout"]


# --------------------------------------------------------------------------- #
# Demo / correctness check
# --------------------------------------------------------------------------- #
if __name__ == "__main__":
    B, M, L = 2, 16, 8
    d_model, nheads, d_head = 32, 4, 8
    in_dim = nheads * d_head

    key = jax.random.PRNGKey(0)
    k1, k2, k3, k4, k5, k6, k7 = jax.random.split(key, 7)

    x = jax.random.normal(k1, (B, M, d_model), dtype=jnp.float32)
    latents = jax.random.normal(k2, (B, L, d_model), dtype=jnp.float32)

    params = {
        "g_m": 1.0 + 0.1 * jax.random.normal(k3, (d_model,), dtype=jnp.float32),
        "b_m": 0.1 * jax.random.normal(k4, (d_model,), dtype=jnp.float32),
        "g_l": 1.0 + 0.1 * jax.random.normal(k5, (d_model,), dtype=jnp.float32),
        "b_l": 0.1 * jax.random.normal(k6, (d_model,), dtype=jnp.float32),
        # Linear weights stored as (in_features, out_features) = W.T of PyTorch.
        # Modest wq magnitude keeps the softmax un-saturated so the bf16 path can
        # be sanity-checked against the f32 reference.
        "wq": jax.random.normal(k7, (d_model, in_dim), dtype=jnp.float32) / d_model,
        "wkv": (jax.random.normal(jax.random.fold_in(key, 11),
                                  (d_model, 2 * in_dim), dtype=jnp.float32)
                / jnp.sqrt(d_model)),
        "wout": (jax.random.normal(jax.random.fold_in(key, 12),
                                   (in_dim, d_model), dtype=jnp.float32)
                 / jnp.sqrt(in_dim)),
    }

    ref = perceiver_attention_ref(x, latents, params, nheads=nheads, d_head=d_head)

    # f32 MXU path: tight check (only the approx softmax reciprocal differs).
    prep_f32 = prepare_perceiver_params(params, nheads=nheads, d_head=d_head,
                                        mxu_dtype=jnp.float32)
    out_f32 = jax.block_until_ready(perceiver_attention(x, latents, prep_f32))
    assert out_f32.shape == (B, L, d_model)
    assert jnp.allclose(out_f32, ref, atol=1e-2, rtol=1e-2), "f32 kernel mismatch vs reference"

    # bf16 MXU path (default, all TPU generations): loose check (bf16 rounding).
    prep_bf16 = prepare_perceiver_params(params, nheads=nheads, d_head=d_head)
    out_bf16 = jax.block_until_ready(perceiver_attention(x, latents, prep_bf16))
    assert out_bf16.shape == (B, L, d_model)
    assert jnp.allclose(out_bf16, ref, atol=2e-1, rtol=2e-1), "bf16 kernel mismatch vs reference"

    print("KERNEL_OK")
</pallas_src>

<mosaic_0001>
module attributes {stable_mosaic.version = 11 : i64} {
  func.func @perceiver_attention_kernel(%arg0: i32, %arg1: memref<1x16x32xf32, #tpu.memory_space<vmem>>, %arg2: memref<1x8x32xf32, #tpu.memory_space<vmem>>, %arg3: memref<1x32xf32, #tpu.memory_space<vmem>>, %arg4: memref<1x32xf32, #tpu.memory_space<vmem>>, %arg5: memref<1x32xf32, #tpu.memory_space<vmem>>, %arg6: memref<1x32xf32, #tpu.memory_space<vmem>>, %arg7: memref<32x32xf32, #tpu.memory_space<vmem>>, %arg8: memref<32x64xf32, #tpu.memory_space<vmem>>, %arg9: memref<32x32xf32, #tpu.memory_space<vmem>>, %arg10: memref<1x8x32xf32, #tpu.memory_space<vmem>>, %arg11: memref<1x24x32xf32, #tpu.memory_space<vmem>>) attributes {dimension_semantics = [#tpu.dimension_semantics<parallel>], iteration_bounds = array<i64: 2>, scalar_prefetch = 0 : i64, scratch_operands = 1 : i64, tpu.core_type = #tpu.core_type<tc>, window_params = [{transform_indices = @transform_0, window_bounds = array<i64: 1, 16, 32>}, {transform_indices = @transform_1, window_bounds = array<i64: 1, 8, 32>}, {pipeline_mode = #tpu.pipeline_mode<synchronous>, transform_indices = @transform_2, window_bounds = array<i64: 1, 32>}, {pipeline_mode = #tpu.pipeline_mode<synchronous>, transform_indices = @transform_3, window_bounds = array<i64: 1, 32>}, {pipeline_mode = #tpu.pipeline_mode<synchronous>, transform_indices = @transform_4, window_bounds = array<i64: 1, 32>}, {pipeline_mode = #tpu.pipeline_mode<synchronous>, transform_indices = @transform_5, window_bounds = array<i64: 1, 32>}, {pipeline_mode = #tpu.pipeline_mode<synchronous>, transform_indices = @transform_6, window_bounds = array<i64: 32, 32>}, {pipeline_mode = #tpu.pipeline_mode<synchronous>, transform_indices = @transform_7, window_bounds = array<i64: 32, 64>}, {pipeline_mode = #tpu.pipeline_mode<synchronous>, transform_indices = @transform_8, window_bounds = array<i64: 32, 32>}, {transform_indices = @transform_9, window_bounds = array<i64: 1, 8, 32>}]} {
    %c0 = arith.constant 0 : index
    %c0_0 = arith.constant 0 : index
    %c0_1 = arith.constant 0 : index
    %0 = vector.load %arg1[%c0, %c0_0, %c0_1] : memref<1x16x32xf32, #tpu.memory_space<vmem>>, vector<1x16x32xf32>
    %1 = vector.shape_cast %0 : vector<1x16x32xf32> to vector<16x32xf32>
    %c0_2 = arith.constant 0 : index
    %c0_3 = arith.constant 0 : index
    %c0_4 = arith.constant 0 : index
    %2 = vector.load %arg2[%c0_2, %c0_3, %c0_4] : memref<1x8x32xf32, #tpu.memory_space<vmem>>, vector<1x8x32xf32>
    %3 = vector.shape_cast %2 : vector<1x8x32xf32> to vector<8x32xf32>
    %c0_5 = arith.constant 0 : index
    %c0_6 = arith.constant 0 : index
    %4 = vector.load %arg3[%c0_5, %c0_6] : memref<1x32xf32, #tpu.memory_space<vmem>>, vector<1x32xf32>
    %c0_7 = arith.constant 0 : index
    %c0_8 = arith.constant 0 : index
    %5 = vector.load %arg4[%c0_7, %c0_8] : memref<1x32xf32, #tpu.memory_space<vmem>>, vector<1x32xf32>
    %cst = arith.constant dense<0.000000e+00> : vector<16xf32>
    %6 = vector.multi_reduction <add>, %1, %cst [1] : vector<16x32xf32> to vector<16xf32>
    %7 = vector.shape_cast %6 : vector<16xf32> to vector<16x1xf32>
    %cst_9 = arith.constant 3.200000e+01 : f32
    %8 = vector.broadcast %cst_9 : f32 to vector<16x1xf32>
    %9 = arith.divf %7, %8 : vector<16x1xf32>
    %10 = vector.broadcast %9 : vector<16x1xf32> to vector<16x32xf32>
    %11 = arith.subf %1, %10 : vector<16x32xf32>
    %12 = arith.mulf %11, %11 : vector<16x32xf32>
    %cst_10 = arith.constant dense<0.000000e+00> : vector<16xf32>
    %13 = vector.multi_reduction <add>, %12, %cst_10 [1] : vector<16x32xf32> to vector<16xf32>
    %14 = vector.shape_cast %13 : vector<16xf32> to vector<16x1xf32>
    %cst_11 = arith.constant 3.200000e+01 : f32
    %15 = vector.broadcast %cst_11 : f32 to vector<16x1xf32>
    %16 = arith.divf %14, %15 : vector<16x1xf32>
    %17 = vector.broadcast %9 : vector<16x1xf32> to vector<16x32xf32>
    %18 = arith.subf %1, %17 : vector<16x32xf32>
    %cst_12 = arith.constant 9.99999974E-6 : f32
    %19 = vector.broadcast %cst_12 : f32 to vector<16x1xf32>
    %20 = arith.addf %16, %19 : vector<16x1xf32>
    %21 = math.rsqrt %20 : vector<16x1xf32>
    %22 = vector.broadcast %21 : vector<16x1xf32> to vector<16x32xf32>
    %23 = arith.mulf %18, %22 : vector<16x32xf32>
    %24 = vector.broadcast %4 : vector<1x32xf32> to vector<16x32xf32>
    %25 = arith.mulf %23, %24 : vector<16x32xf32>
    %26 = vector.broadcast %5 : vector<1x32xf32> to vector<16x32xf32>
    %27 = arith.addf %25, %26 : vector<16x32xf32>
    %c0_13 = arith.constant 0 : index
    %c0_14 = arith.constant 0 : index
    %28 = vector.load %arg5[%c0_13, %c0_14] : memref<1x32xf32, #tpu.memory_space<vmem>>, vector<1x32xf32>
    %c0_15 = arith.constant 0 : index
    %c0_16 = arith.constant 0 : index
    %29 = vector.load %arg6[%c0_15, %c0_16] : memref<1x32xf32, #tpu.memory_space<vmem>>, vector<1x32xf32>
    %cst_17 = arith.constant dense<0.000000e+00> : vector<8xf32>
    %30 = vector.multi_reduction <add>, %3, %cst_17 [1] : vector<8x32xf32> to vector<8xf32>
    %31 = vector.shape_cast %30 : vector<8xf32> to vector<8x1xf32>
    %cst_18 = arith.constant 3.200000e+01 : f32
    %32 = vector.broadcast %cst_18 : f32 to vector<8x1xf32>
    %33 = arith.divf %31, %32 : vector<8x1xf32>
    %34 = vector.broadcast %33 : vector<8x1xf32> to vector<8x32xf32>
    %35 = arith.subf %3, %34 : vector<8x32xf32>
    %36 = arith.mulf %35, %35 : vector<8x32xf32>
    %cst_19 = arith.constant dense<0.000000e+00> : vector<8xf32>
    %37 = vector.multi_reduction <add>, %36, %cst_19 [1] : vector<8x32xf32> to vector<8xf32>
    %38 = vector.shape_cast %37 : vector<8xf32> to vector<8x1xf32>
    %cst_20 = arith.constant 3.200000e+01 : f32
    %39 = vector.broadcast %cst_20 : f32 to vector<8x1xf32>
    %40 = arith.divf %38, %39 : vector<8x1xf32>
    %41 = vector.broadcast %33 : vector<8x1xf32> to vector<8x32xf32>
    %42 = arith.subf %3, %41 : vector<8x32xf32>
    %cst_21 = arith.constant 9.99999974E-6 : f32
    %43 = vector.broadcast %cst_21 : f32 to vector<8x1xf32>
    %44 = arith.addf %40, %43 : vector<8x1xf32>
    %45 = math.rsqrt %44 : vector<8x1xf32>
    %46 = vector.broadcast %45 : vector<8x1xf32> to vector<8x32xf32>
    %47 = arith.mulf %42, %46 : vector<8x32xf32>
    %48 = vector.broadcast %28 : vector<1x32xf32> to vector<8x32xf32>
    %49 = arith.mulf %47, %48 : vector<8x32xf32>
    %50 = vector.broadcast %29 : vector<1x32xf32> to vector<8x32xf32>
    %51 = arith.addf %49, %50 : vector<8x32xf32>
    %52 = vector.shape_cast %27 : vector<16x32xf32> to vector<1x16x32xf32>
    %c0_22 = arith.constant 0 : index
    %c0_23 = arith.constant 0 : index
    %c0_24 = arith.constant 0 : index
    %53 = vector.load %arg11[%c0_22, %c0_23, %c0_24] : memref<1x24x32xf32, #tpu.memory_space<vmem>>, vector<1x16x32xf32>
    tpu.vector_store %arg11[%c0_22, %c0_23, %c0_24], %52 {strides = array<i32>} : memref<1x24x32xf32, #tpu.memory_space<vmem>>, vector<1x16x32xf32>,
    %54 = vector.shape_cast %51 : vector<8x32xf32> to vector<1x8x32xf32>
    %c0_25 = arith.constant 0 : index
    %c16 = arith.constant 16 : index
    %c0_26 = arith.constant 0 : index
    %55 = vector.load %arg11[%c0_25, %c16, %c0_26] : memref<1x24x32xf32, #tpu.memory_space<vmem>>, vector<1x8x32xf32>
    tpu.vector_store %arg11[%c0_25, %c16, %c0_26], %54 {strides = array<i32>} : memref<1x24x32xf32, #tpu.memory_space<vmem>>, vector<1x8x32xf32>,
    %c0_27 = arith.constant 0 : index
    %c0_28 = arith.constant 0 : index
    %c0_29 = arith.constant 0 : index
    %56 = vector.load %arg11[%c0_27, %c0_28, %c0_29] : memref<1x24x32xf32, #tpu.memory_space<vmem>>, vector<1x24x32xf32>
    %57 = vector.shape_cast %56 : vector<1x24x32xf32> to vector<24x32xf32>
    %c0_30 = arith.constant 0 : index
    %c0_31 = arith.constant 0 : index
    %58 = vector.load %arg7[%c0_30, %c0_31] : memref<32x32xf32, #tpu.memory_space<vmem>>, vector<32x32xf32>
    %cst_32 = arith.constant dense<0.000000e+00> : vector<8x32xf32>
    %59 = tpu.matmul %51, %58, %cst_32 {dimension_numbers = #tpu.dot_dimension_numbers<[1], [0], [0], [1], [0, 0, 1, 1], [], []>} : vector<8x32xf32>, vector<32x32xf32>, vector<8x32xf32> -> vector<8x32xf32>
    %c0_33 = arith.constant 0 : index
    %c0_34 = arith.constant 0 : index
    %60 = vector.load %arg8[%c0_33, %c0_34] : memref<32x64xf32, #tpu.memory_space<vmem>>, vector<32x64xf32>
    %cst_35 = arith.constant dense<0.000000e+00> : vector<24x64xf32>
    %61 = tpu.matmul %57, %60, %cst_35 {dimension_numbers = #tpu.dot_dimension_numbers<[1], [0], [0], [1], [0, 0, 1, 1], [], []>} : vector<24x32xf32>, vector<32x64xf32>, vector<24x64xf32> -> vector<24x64xf32>
    %62 = vector.extract_strided_slice %61 {offsets = [0, 0], sizes = [24, 32], strides = [1, 1]} : vector<24x64xf32> to vector<24x32xf32>
    %63 = vector.extract_strided_slice %61 {offsets = [0, 32], sizes = [24, 32], strides = [1, 1]} : vector<24x64xf32> to vector<24x32xf32>
    %64 = vector.shape_cast %59 : vector<8x32xf32> to vector<8x4x8xf32>
    %65 = tpu.transpose %64, [1, 0, 2] : vector<8x4x8xf32> -> vector<4x8x8xf32>
    %66 = vector.shape_cast %62 : vector<24x32xf32> to vector<24x4x8xf32>
    %67 = tpu.transpose %66, [1, 0, 2] : vector<24x4x8xf32> -> vector<4x24x8xf32>
    %68 = vector.shape_cast %63 : vector<24x32xf32> to vector<24x4x8xf32>
    %69 = tpu.transpose %68, [1, 0, 2] : vector<24x4x8xf32> -> vector<4x24x8xf32>
    "tpu.trace_start"() <{level = 10 : i32, message = "gid,gjd->gij"}> : () -> ()
    %cst_36 = arith.constant dense<0.000000e+00> : vector<4x8x24xf32>
    %70 = tpu.matmul %65, %67, %cst_36 {dimension_numbers = #tpu.dot_dimension_numbers<[2], [2], [1], [1], [0, 0, 0, 1, 1, 1], [0], [0]>} : vector<4x8x8xf32>, vector<4x24x8xf32>, vector<4x8x24xf32> -> vector<4x8x24xf32>
    "tpu.trace_stop"() : () -> ()
    %cst_37 = arith.constant dense<0xFF800000> : vector<4x8xf32>
    %71 = vector.multi_reduction <maximumf>, %70, %cst_37 [2] : vector<4x8x24xf32> to vector<4x8xf32>
    %72 = vector.shape_cast %71 : vector<4x8xf32> to vector<4x8x1xf32>
    %73 = vector.broadcast %72 : vector<4x8x1xf32> to vector<4x8x24xf32>
    %74 = arith.subf %70, %73 : vector<4x8x24xf32>
    %75 = math.exp %74 : vector<4x8x24xf32>
    %cst_38 = arith.constant dense<0.000000e+00> : vector<4x8xf32>
    %76 = vector.multi_reduction <add>, %75, %cst_38 [2] : vector<4x8x24xf32> to vector<4x8xf32>
    %77 = vector.shape_cast %76 : vector<4x8xf32> to vector<4x8x1xf32>
    %78 = tpu.reciprocal %77 {approx = true} : vector<4x8x1xf32> -> vector<4x8x1xf32>
    %79 = vector.broadcast %78 : vector<4x8x1xf32> to vector<4x8x24xf32>
    %80 = arith.mulf %75, %79 : vector<4x8x24xf32>
    "tpu.trace_start"() <{level = 10 : i32, message = "gij,gjd->gid"}> : () -> ()
    %cst_39 = arith.constant dense<0.000000e+00> : vector<4x8x8xf32>
    %81 = tpu.matmul %80, %69, %cst_39 {dimension_numbers = #tpu.dot_dimension_numbers<[2], [1], [1], [2], [0, 0, 0, 1, 1, 2], [0], [0]>} : vector<4x8x24xf32>, vector<4x24x8xf32>, vector<4x8x8xf32> -> vector<4x8x8xf32>
    "tpu.trace_stop"() : () -> ()
    %82 = tpu.transpose %81, [1, 0, 2] : vector<4x8x8xf32> -> vector<8x4x8xf32>
    %83 = vector.shape_cast %82 : vector<8x4x8xf32> to vector<8x32xf32>
    %c0_40 = arith.constant 0 : index
    %c0_41 = arith.constant 0 : index
    %84 = vector.load %arg9[%c0_40, %c0_41] : memref<32x32xf32, #tpu.memory_space<vmem>>, vector<32x32xf32>
    %cst_42 = arith.constant dense<0.000000e+00> : vector<8x32xf32>
    %85 = tpu.matmul %83, %84, %cst_42 {dimension_numbers = #tpu.dot_dimension_numbers<[1], [0], [0], [1], [0, 0, 1, 1], [], []>} : vector<8x32xf32>, vector<32x32xf32>, vector<8x32xf32> -> vector<8x32xf32>
    %86 = vector.shape_cast %85 : vector<8x32xf32> to vector<1x8x32xf32>
    %c0_43 = arith.constant 0 : index
    %c0_44 = arith.constant 0 : index
    %c0_45 = arith.constant 0 : index
    %87 = vector.load %arg10[%c0_43, %c0_44, %c0_45] : memref<1x8x32xf32, #tpu.memory_space<vmem>>, vector<1x8x32xf32>
    tpu.vector_store %arg10[%c0_43, %c0_44, %c0_45], %86 {strides = array<i32>} : memref<1x8x32xf32, #tpu.memory_space<vmem>>, vector<1x8x32xf32>,
    return
  }
  func.func @transform_0(%arg0: i32) -> (i32, i32, i32) {
    %c0_i32 = arith.constant 0 : i32
    %c0_i32_0 = arith.constant 0 : i32
    %c0_i32_1 = arith.constant 0 : i32
    return %arg0, %c0_i32, %c0_i32_0 : i32, i32, i32
  }
  func.func @transform_1(%arg0: i32) -> (i32, i32, i32) {
    %c0_i32 = arith.constant 0 : i32
    %c0_i32_0 = arith.constant 0 : i32
    %c0_i32_1 = arith.constant 0 : i32
    return %arg0, %c0_i32, %c0_i32_0 : i32, i32, i32
  }
  func.func @transform_2(%arg0: i32) -> (i32, i32) {
    %c0_i32 = arith.constant 0 : i32
    %c0_i32_0 = arith.constant 0 : i32
    %c0_i32_1 = arith.constant 0 : i32
    return %c0_i32, %c0_i32_0 : i32, i32
  }
  func.func @transform_3(%arg0: i32) -> (i32, i32) {
    %c0_i32 = arith.constant 0 : i32
    %c0_i32_0 = arith.constant 0 : i32
    %c0_i32_1 = arith.constant 0 : i32
    return %c0_i32, %c0_i32_0 : i32, i32
  }
  func.func @transform_4(%arg0: i32) -> (i32, i32) {
    %c0_i32 = arith.constant 0 : i32
    %c0_i32_0 = arith.constant 0 : i32
    %c0_i32_1 = arith.constant 0 : i32
    return %c0_i32, %c0_i32_0 : i32, i32
  }
  func.func @transform_5(%arg0: i32) -> (i32, i32) {
    %c0_i32 = arith.constant 0 : i32
    %c0_i32_0 = arith.constant 0 : i32
    %c0_i32_1 = arith.constant 0 : i32
    return %c0_i32, %c0_i32_0 : i32, i32
  }
  func.func @transform_6(%arg0: i32) -> (i32, i32) {
    %c0_i32 = arith.constant 0 : i32
    %c0_i32_0 = arith.constant 0 : i32
    %c0_i32_1 = arith.constant 0 : i32
    return %c0_i32, %c0_i32_0 : i32, i32
  }
  func.func @transform_7(%arg0: i32) -> (i32, i32) {
    %c0_i32 = arith.constant 0 : i32
    %c0_i32_0 = arith.constant 0 : i32
    %c0_i32_1 = arith.constant 0 : i32
    return %c0_i32, %c0_i32_0 : i32, i32
  }
  func.func @transform_8(%arg0: i32) -> (i32, i32) {
    %c0_i32 = arith.constant 0 : i32
    %c0_i32_0 = arith.constant 0 : i32
    %c0_i32_1 = arith.constant 0 : i32
    return %c0_i32, %c0_i32_0 : i32, i32
  }
  func.func @transform_9(%arg0: i32) -> (i32, i32, i32) {
    %c0_i32 = arith.constant 0 : i32
    %c0_i32_0 = arith.constant 0 : i32
    %c0_i32_1 = arith.constant 0 : i32
    return %arg0, %c0_i32, %c0_i32_0 : i32, i32, i32
  }
}

</mosaic_0001>

<bundles_post_ra>
// kernel: tpu_custom_call.1
= control target key start
LH: loop header
LB: loop body
LE: loop exit
PB: predicated region body
PF: predicated region fallthrough
CT: control target
= control target key end

     0   :  { %s4172_s0 = inlined_call_operand.hbm [shape: f32[2,16,32], index: 0, kind: input, shape index: {}]   ;;  %s4173_s1 = inlined_call_operand.hbm [shape: f32[2,8,32], index: 1, kind: input, shape index: {}]   ;;  %s4174_s2 = inlined_call_operand.vmem [shape: f32[1,32], index: 2, kind: input, shape index: {}]   ;;  %s4175_s3 = inlined_call_operand.vmem [shape: f32[1,32], index: 3, kind: input, shape index: {}]   ;;  %s4176_s4 = inlined_call_operand.vmem [shape: f32[1,32], index: 4, kind: input, shape index: {}]   ;;  %s4177_s5 = inlined_call_operand.vmem [shape: f32[1,32], index: 5, kind: input, shape index: {}]   ;;  %s4178_s6 = inlined_call_operand.hbm [shape: f32[32,32], index: 6, kind: input, shape index: {}]   ;;  %s4179_s7 = inlined_call_operand.hbm [shape: f32[32,64], index: 7, kind: input, shape index: {}]   ;;  %s4180_s8 = inlined_call_operand.hbm [shape: f32[32,32], index: 8, kind: input, shape index: {}]   ;;  %s4181_s9 = inlined_call_operand.hbm [shape: f32[2,8,32], index: 9, kind: output, shape index: {}]  }
   0x1   :  { %4190 = sst [smem:[#allocation20_spill]] %s4172_s0 }
   0x2   :  { %4191 = sst [smem:[#allocation21_spill]] %s4178_s6 }
   0x3   :  { %4192 = sst [smem:[#allocation22_spill]] %s4179_s7 }
   0x4   :  { %4193 = sst [smem:[#allocation23_spill]] %s4180_s8 }
   0x5   :  { %4194 = sst [smem:[#allocation24_spill]] %s4181_s9 }
   0x6   :  { %14 = vsyncpa [#allocation4], 0 }
   0x7   :  { %16 = vsyncpa [#allocation4 + $0x1], 0 }
   0x8   :  { %17 = vsyncpa [#allocation7], 0 }
   0x9   :  { %19 = vsyncpa [#allocation7 + $0x1], 0 }
   0xa   :  { %20 = vsyncpa [#allocation10], 0 }
   0xb   :  { %21 = vsyncpa [#allocation5], 0 }
   0xc   :  { %23 = vsyncpa [#allocation5 + $0x1], 0  ;;  %s3430_s30 = smov 0   ;;  %s3432_s10 = smov 0  }
   0xd   :  { %s3434_s11 = smov 0   ;;  %s3436_s12 = smov 0  }
   0xe LB: > { %4195 = sst [smem:[#allocation18_spill]] %s3346_s30  ;;  %s3451_s13 = sadd.s32 4294967295, %s3358_s12   ;;  %s3358_s12 = sphi %s3436_s12, %s4228_s12   ;;  %s3354_s11 = sphi %s3434_s11, %s4227_s11   ;;  %s3350_s10 = sphi %s3432_s10, %s4226_s10   ;;  %s3346_s30 = sphi %s3430_s30, %s4225_s30  }
   0xf   : > { %s2744_s14 = sadd.s32 4294967294, %s3358_s12   ;;  %p49_p0 = scmp.ne.s32.totalorder %s3350_s10, %s3346_s30 }
  0x10   : > { %p4182_p1 = scmp.eq.s32.totalorder %s3451_s13, 0  ;;  %p252_p3 = scmp.eq.s32.totalorder %s2744_s14, 1 }
  0x11   : > { %p2745_p5 = scmp.ge.s32.totalorder %s3358_s12, 1  ;;  %p259_p7 = scmp.lt.s32.totalorder %s3358_s12, 3 }
  0x12   : > { %p3460_p4 = por %p4182_p1, %p49_p0  ;;  %p3465_p6 = por %p252_p3, %p49_p0 }
  0x13   : > { %p3470_p8 = pnand %p2745_p5, %p259_p7  ;;  %s3360_s18 = smov [#allocation8]  }
  0x14   : > { %s4196_s15 = scalar_select %p3460_p4, 1, 0 }
  0x15   : > { %s4197_s16 = scalar_select %p3465_p6, 1, 0 }
  0x16   : > { %s4199_s17 = scalar_select %p3470_p8, 1, 0 }
  0x17   : > { %4198 = sst [smem:[#allocation19_spill]] %s4197_s16  ;;  %s283_s19 = sshll.u32 %s3360_s18, 4  ;;  %s3474_s19 = int_to_ptr.vmem [resolvable:$true] %s283_s19 }
  0x18   : > { %p3036_p9 = pneg %p3470_p8  ;;  %s3361_s21 = smov [#allocation9]  }
  0x19   : > { %s296_s22 = sshll.u32 %s3361_s21, 4  ;;  %s3362_s23 = smov [#allocation11]   ;;  %s3485_s22 = int_to_ptr.vmem [resolvable:$true] %s296_s22 }
  0x1a   : > { %p3481_p11 = pnand %p3036_p9, %p4182_p1  ;;  %s3487_s24 = sshll.u32 %s3362_s23, 4  ;;  %s310_s24 = int_to_ptr.vmem [resolvable:$true] %s3487_s24 }
  0x1b   : > { %s4201_s6 = sld [smem:[#allocation21_spill]] }
  0x1c   : > { %p3497_p13 = pneg %p3481_p11 }
  0x21   : > { %s3136_s27 = scalar_lea.hbm %s4201_s6, 512 }
  0x22   : > { %p3137_p12 = scmp.ne.s32.totalorder %s4201_s6, %s3136_s27  ;;  %p3143_p5 = scmp.lt.u32.totalorder %s3136_s27, %s4201_s6 }
  0x24   : > { %p3139_p0 = pnand %p3497_p13, %p3137_p12 }
  0x26   : > { %p3140_p3 = pneg %p3139_p0 }
  0x28   : > { %p3145_p7 = pnand %p3143_p5, %p3140_p3 }
  0x2a   : > { %3148 = shalt.err (!%p3145_p7)
}
  0x2b   : > { %s3149_s23 = scalar_lea.vmem %s3474_s19, 512  ;;  %p3157_p2 = scmp.lt.s32.totalorder %s3474_s19, %s3474_s19 }
  0x2c   : > { %p3150_p9 = scmp.ne.s32.totalorder %s3474_s19, %s3149_s23  ;;  %p3158_p6 = scmp.lt.s32.totalorder %s3149_s23, %s3149_s23 }
  0x2e   : > { %p3152_p10 = pnand %p3150_p9, %p3497_p13  ;;  %p3159_p12 = por %p3158_p6, %p3157_p2 }
  0x30   : > { %p3153_p1 = pneg %p3152_p10 }
  0x32   : > { %p3160_p0 = pnand %p3159_p12, %p3153_p1 }
  0x34   : > { %3163 = shalt.err (!%p3160_p0)
}
  0x35   : > { %s4188_s25 = smov 128   ;;  %s3364_s26 = smov 8  }
  0x36   : > { %3039 = dma.hbm_to_vmem [thread:$0]  (!%p3481_p11), %s4201_s6, 512, %s3474_s19, [#allocation7], %s4188_s25, %s4188_s25, %s3364_s26  }
  0x37   : > { %s4203_s7 = sld [smem:[#allocation22_spill]] }
  0x3d   : > { %s3164_s21 = scalar_lea.hbm %s4203_s7, 512 }
  0x3e   : > { %p3165_p1 = scmp.ne.s32.totalorder %s4203_s7, %s3164_s21  ;;  %p3171_p10 = scmp.lt.u32.totalorder %s3164_s21, %s4203_s7 }
  0x40   : > { %p3167_p2 = pnand %p3165_p1, %p3497_p13 }
  0x42   : > { %p3168_p6 = pneg %p3167_p2 }
  0x44   : > { %p3173_p3 = pnand %p3171_p10, %p3168_p6 }
  0x46   : > { %3176 = shalt.err (!%p3173_p3)
}
  0x47   : > { %s3177_s19 = scalar_lea.vmem %s3485_s22, 512  ;;  %p3185_p12 = scmp.lt.s32.totalorder %s3485_s22, %s3485_s22 }
  0x48   : > { %p3178_p5 = scmp.ne.s32.totalorder %s3485_s22, %s3177_s19  ;;  %p3186_p0 = scmp.lt.s32.totalorder %s3177_s19, %s3177_s19 }
  0x4a   : > { %p3180_p7 = pnand %p3178_p5, %p3497_p13  ;;  %p3187_p1 = por %p3186_p0, %p3185_p12 }
  0x4c   : > { %p3181_p9 = pneg %p3180_p7 }
  0x4e   : > { %p3188_p2 = pnand %p3187_p1, %p3181_p9 }
  0x50   : > { %3191 = shalt.err (!%p3188_p2)
}
  0x51   : > { %3042 = dma.hbm_to_vmem [thread:$0]  (!%p3481_p11), %s4203_s7, 512, %s3485_s22, [#allocation10], %s4188_s25, %s4188_s25, %s3364_s26  }
  0x52   : > { %s4204_s8 = sld [smem:[#allocation23_spill]] }
  0x58   : > { %s3192_s28 = scalar_lea.hbm %s4204_s8, 512 }
  0x59   : > { %p3193_p6 = scmp.ne.s32.totalorder %s4204_s8, %s3192_s28  ;;  %p3199_p5 = scmp.lt.u32.totalorder %s3192_s28, %s4204_s8 }
  0x5b   : > { %p3195_p10 = pnand %p3193_p6, %p3497_p13 }
  0x5d   : > { %p3196_p3 = pneg %p3195_p10 }
  0x5f   : > { %p3201_p7 = pnand %p3199_p5, %p3196_p3 }
  0x61   : > { %3204 = shalt.err (!%p3201_p7)
}
  0x62   : > { %s3205_s19 = scalar_lea.vmem %s310_s24, 512  ;;  %p3213_p1 = scmp.lt.s32.totalorder %s310_s24, %s310_s24 }
  0x63   : > { %p3206_p9 = scmp.ne.s32.totalorder %s310_s24, %s3205_s19  ;;  %p3214_p2 = scmp.lt.s32.totalorder %s3205_s19, %s3205_s19 }
  0x65   : > { %p3208_p12 = pnand %p3206_p9, %p3497_p13  ;;  %p3215_p4 = por %p3214_p2, %p3213_p1 }
  0x67   : > { %p3209_p0 = pneg %p3208_p12 }
  0x69   : > { %p3216_p8 = pnand %p3215_p4, %p3209_p0 }
  0x6b   : > { %3219 = shalt.err (!%p3216_p8)
}
  0x6c   : > { %3045 = dma.hbm_to_vmem [thread:$0]  (!%p3481_p11), %s4204_s8, 512, %s310_s24, [#allocation10], %s4188_s25, %s4188_s25, %s3364_s26  }
  0x6d   : > { %s3570_s14 = sadd.s32 1, %s3358_s12   ;;  %s36_s30 = sadd.s32 1, %s3354_s11 }
  0x6e   : > { %s33_s20 = ssub.s32 %s3358_s12, %s3570_s14  ;;  %p43_p8 = scmp.ne.s32.totalorder %s3354_s11, %s3350_s10 }
  0x6f   : > { %p34_p4 = scmp.eq.s32.totalorder %s33_s20, 0  ;;  %p44_p13 = scmp.eq.s32.totalorder %s3358_s12, 0 }
  0x70   : > { %p3060_p6 = scmp.lt.s32.totalorder %s3358_s12, 2  ;;  %p4205_p3 = scmp.eq.s32.totalorder %s3451_s13, 1 }
  0x71   : > { %s3580_s16 = scalar_select %p34_p4, %s3354_s11, %s36_s30  }
  0x72   : > { %p45_p10 = por %p44_p13, %p43_p8  ;;  %p3584_p5 = por %p4205_p3, %p43_p8 }
  0x73   : > { %s3589_s28 = sand.u32 1, %s3354_s11   ;;  %s2811_s24 = sshll.u32 %s3358_s12, 8 }
  0x74   : > { %s4206_s27 = scalar_select %p3584_p5, 1, 0 }
  0x75   : > { %s2750_s29 = sshll.u32 %s3589_s28, 4  ;;  %s4207_s0 = sld [smem:[#allocation20_spill]] }
  0x76   : > { %s327_s19 = scalar_lea.vmem [#allocation3], %s2750_s29  ;;  %p3598_p11 = pnand %p3060_p6, %p45_p10 }
  0x77   : > { %s334_s22 = sshll.u32 %s327_s19, 4  ;;  %s324_s30 = scalar_lea.sflag [#allocation4], %s3589_s28  ;;  %s3602_s22 = int_to_ptr.vmem [resolvable:$true] %s334_s22 }
  0x78   : > { %p3222_p9 = pneg %p3598_p11 }
  0x7b   : > { %s3596_s23 = scalar_lea.hbm %s4207_s0, %s2811_s24  ;;  %s3225_s18 = scalar_lea.hbm %s4207_s0, 512 }
  0x7c   : > { %s3220_s25 = scalar_lea.hbm %s3596_s23, 256  ;;  %p3226_p1 = scmp.lt.u32.totalorder %s3596_s23, %s4207_s0 }
  0x7d   : > { %p3221_p7 = scmp.ne.s32.totalorder %s3596_s23, %s3220_s25  ;;  %p3227_p2 = scmp.lt.u32.totalorder %s3225_s18, %s3220_s25 }
  0x7e   : > { %p3229_p8 = scmp.lt.u32.totalorder %s3220_s25, %s3596_s23 }
  0x7f   : > { %p3223_p12 = pnand %p3222_p9, %p3221_p7  ;;  %p3228_p4 = por %p3227_p2, %p3226_p1 }
  0x81   : > { %p3224_p0 = pneg %p3223_p12  ;;  %p3230_p13 = por %p3229_p8, %p3228_p4 }
  0x83   : > { %p3231_p6 = pnand %p3230_p13, %p3224_p0 }
  0x85   : > { %3234 = shalt.err (!%p3231_p6)
}
  0x86   : > { %s3235_s20 = scalar_lea.vmem %s3602_s22, 256  ;;  %s3365_s24 = smov [#allocation3]  }
  0x87   : > { %p3236_p10 = scmp.ne.s32.totalorder %s3602_s22, %s3235_s20  ;;  %s3240_s29 = sshll.u32 %s3365_s24, 4  ;;  %s3241_s29 = int_to_ptr.vmem [resolvable:$false] %s3240_s29 }
  0x88   : > { %s3242_s21 = scalar_lea.vmem %s3241_s29, 512  ;;  %p3243_p12 = scmp.lt.s32.totalorder %s3602_s22, %s3241_s29 }
  0x89   : > { %p3238_p3 = pnand %p3236_p10, %p3222_p9  ;;  %p3244_p1 = scmp.lt.s32.totalorder %s3242_s21, %s3235_s20 }
  0x8b   : > { %p3239_p7 = pneg %p3238_p3  ;;  %p3245_p2 = por %p3244_p1, %p3243_p12 }
  0x8d   : > { %p3246_p4 = pnand %p3245_p2, %p3239_p7 }
  0x8f   : > { %3249 = shalt.err (!%p3246_p4)
}
  0x90   : > { %s4209_s25 = smov 128   ;;  %s2753_s18 = sshll.u32 %s3589_s28, 3 }
  0x91   : > { %3049 = dma.hbm_to_vmem [thread:$0]  (!%p3598_p11), %s3596_s23, 256, %s3602_s22, %s324_s30, %s4209_s25, %s4209_s25, %s3364_s26  }
  0x92   : > { %s2754_s19 = sshll.u32 %s3358_s12, 7  ;;  %s348_s21 = scalar_lea.vmem [#allocation6], %s2753_s18 }
  0x93   : > { %s3641_s29 = scalar_lea.hbm %s4173_s1, %s2754_s19  ;;  %s355_s0 = sshll.u32 %s348_s21, 4  ;;  %s356_s0 = int_to_ptr.vmem [resolvable:$true] %s355_s0 }
  0x94   : > { %s4210_s6 = sand.u32 1, %s3358_s12   ;;  %s3250_s8 = scalar_lea.hbm %s3641_s29, 128 }
  0x95   : > { %s345_s7 = scalar_lea.sflag [#allocation7], %s4210_s6  ;;  %p3251_p0 = scmp.ne.s32.totalorder %s3641_s29, %s3250_s8 }
  0x96   : > { %s3255_s23 = scalar_lea.hbm %s4173_s1, 256  ;;  %p3256_p6 = scmp.lt.u32.totalorder %s3641_s29, %s4173_s1 }
  0x97   : > { %p3253_p8 = pnand %p3251_p0, %p3222_p9  ;;  %p3257_p10 = scmp.lt.u32.totalorder %s3255_s23, %s3250_s8 }
  0x98   : > { %p3259_p7 = scmp.lt.u32.totalorder %s3250_s8, %s3641_s29 }
  0x99   : > { %p3254_p13 = pneg %p3253_p8  ;;  %p3258_p3 = por %p3257_p10, %p3256_p6 }
  0x9b   : > { %p3260_p12 = por %p3259_p7, %p3258_p3 }
  0x9d   : > { %p3261_p1 = pnand %p3260_p12, %p3254_p13 }
  0x9f   : > { %3264 = shalt.err (!%p3261_p1)
}
  0xa0   : > { %s3265_s6 = scalar_lea.vmem %s356_s0, 128  ;;  %s3366_s25 = smov [#allocation6]  }
  0xa1   : > { %p3266_p2 = scmp.ne.s32.totalorder %s356_s0, %s3265_s6  ;;  %s3270_s18 = sshll.u32 %s3366_s25, 4  ;;  %s3271_s18 = int_to_ptr.vmem [resolvable:$false] %s3270_s18 }
  0xa2   : > { %s3272_s19 = scalar_lea.vmem %s3271_s18, 256  ;;  %p3273_p8 = scmp.lt.s32.totalorder %s356_s0, %s3271_s18 }
  0xa3   : > { %p3268_p4 = pnand %p3266_p2, %p3222_p9  ;;  %p3274_p5 = scmp.lt.s32.totalorder %s3272_s19, %s3265_s6 }
  0xa5   : > { %p3269_p0 = pneg %p3268_p4  ;;  %p3275_p6 = por %p3274_p5, %p3273_p8 }
  0xa7   : > { %p3276_p10 = pnand %p3275_p6, %p3269_p0 }
  0xa9   : > { %3279 = shalt.err (!%p3276_p10)
}
  0xaa   : > { %3052 = dma.hbm_to_vmem [thread:$0]  (!%p3598_p11), %s3641_s29, 128, %s356_s0, %s345_s7  }
  0xab   : > { %p4211_p13 = scmp.ne.s32.totalorder %s4199_s17, 0 }
  0xac   : > { %s3667_s8 = sand.u32 (!%p4211_p13), 1, %s3350_s10   ;;  %p4212_p9 = scmp.ne.s32.totalorder (!%p4211_p13), %s4196_s15, 0 }
  0xad   : > { %364 = sbr.rel (%p4211_p13) target bundleno = 2056 (0x808), region = 56  ;;  %s2756_s20 = sshll.u32 (!%p4211_p13), %s3667_s8, 4 }
  0xae   : > { %s367_s24 = scalar_lea.sflag (!%p4211_p13), [#allocation4], %s3667_s8  ;;  %s370_s21 = scalar_lea.vmem (!%p4211_p13), [#allocation3], %s2756_s20 }
  0xb4   : > { %3325 = dma.done.wait (%p4212_p9), %s367_s24, 256  }
  0xb5   : > { %3327 = vsyncadd (%p4212_p9), %s367_s24, 4294967040  ;;  %s375_s0 = sand.u32 1, %s3451_s13   ;;  %s2757_s7 = sshll.u32 %s3667_s8, 3 }
  0xb6   : > { %s376_s17 = scalar_lea.sflag [#allocation7], %s375_s0  ;;  %s379_s9 = scalar_lea.vmem [#allocation6], %s2757_s7 }
  0xb7   : > { %3329 = dma.done.wait (%p4212_p9), %s376_s17, 128  }
  0xb8   : > { %3331 = vsyncadd (%p4212_p9), %s376_s17, 4294967168  ;;  %p4213_p5 = scmp.eq.s32.totalorder %s3451_s13, 0 }
  0xba   : > { %3333 = dma.done.wait (%p4213_p5), [#allocation7], 512   ;;  %p4214_p11 = pmov %p4213_p5 }
  0xbb   : > { %p4215_p3 = pmov %p4213_p5 }
  0xbc   : > { %3335 = vsyncadd (%p4214_p11), [#allocation7], 4294966784 }
  0xbd   : > { %3337 = dma.done.wait (%p4215_p3), [#allocation10], 1024   ;;  %p4216_p7 = pmov %p4215_p3 }
  0xbe   : > { %vm436_vm0 = vcmask 261120   ;;  %v431_v0 = vld [vmem:[%s370_s21] sm:$0xff]  ;;  %v432_v2 = vld [vmem:[%s370_s21 + $0x8] sm:$0xff]  ;;  %v3367_v24 = vmov 0.0|0.0   ;;  %vm3368_vm1 = vmmov 0   ;;  %v3369_v33 = vmov 0.0  }
  0xbf   : > { %3339 = vsyncadd (%p4216_p7), [#allocation10], 4294966272  ;;  %v433_v1 = vld [vmem:[%s379_s9] sm:$0xff]  ;;  %v437_v3 = vsel %vm436_vm0, %v431_v0, 0.0  ;;  %v440_v5 = vsel %vm436_vm0, %v432_v2, 0.0  ;;  %v515_v21 = vld [vmem:[#allocation8] sm:$0xff]  ;;  %2972 = vmatprep.subr.bf16.mxu0 %v3367_v24  ;;  %2978 = vmatprep.subr.bf16.mxu1 %v3367_v24 }
  0xc0   : > { %v482_v4 = vsel %vm436_vm0, %v433_v1, 0.0  ;;  %438 = vadd.xlane.f32.xlu0 %v437_v3  ;;  %v516_v22 = vld [vmem:[#allocation8 + $0x8] sm:$0xff]  ;;  %v517_v25 = vld [vmem:[#allocation8 + $0x10] sm:$0xff]  ;;  %v518_v26 = vld [vmem:[#allocation8 + $0x18] sm:$0xff]  ;;  %2869 = vmatprep.mubr.msk.f32.mxu0 %vm3368_vm1, %v3369_v33  ;;  %s3370_s25 = smov 112   ;;  %s3371_s18 = smov 120  }
  0xc1   : > { %483 = vadd.xlane.f32.xlu1 %v482_v4  ;;  %v2973_v23 = vpack.c.bf16 %v516_v22, %v515_v21  ;;  %v592_v27 = vld [vmem:[#allocation9] sm:$0xff]  ;;  %v2976_v28 = vpack.c.bf16 %v518_v26, %v517_v25  ;;  %v593_v29 = vld [vmem:[#allocation9 + $0x8] sm:$0xff]  ;;  %v594_v31 = vld [vmem:[#allocation9 + $0x10] sm:$0xff]  ;;  %2880 = vmatprep.mubr.msk.f32.mxu1 %vm3368_vm1, %v3369_v33  ;;  %s3372_s19 = smov 104   ;;  %vm1713_vm2 = vcmask 64512   ;;  %vm2042_vm4 = vcmask 195584  }
  0xc2   : > { %v2979_v30 = vpack.c.bf16 %v593_v29, %v592_v27  ;;  %v595_v32 = vld [vmem:[#allocation9 + $0x18] sm:$0xff]  ;;  %vm3890_vm3 = vmpackc.low %vm1713_vm2, %vm1713_vm2  ;;  %s3375_s20 = smov 96   ;;  %s3376_s24 = smov 16   ;;  %vm2528_vm5 = vcmask 130048  }
  0xc3   : > { %2974 = vmatpush3.bf16.msra.mxu0 %v2973_v23  ;;  %v2982_v34 = vpack.c.bf16 %v595_v32, %v594_v31  ;;  %v2762_v45 = vld [vmem:[%s4174_s2] ss:$0 sm:$0xff]  ;;  %s3377_s21 = smov 8   ;;  %s3378_s0 = smov 24  }
  0xc4   : > { %441 = vadd.xlane.f32.xlu0 %v440_v5  ;;  %2975 = vmatprep.subr.bf16.mxu0 %v3367_v24  ;;  %v2763_v47 = vld [vmem:[%s4175_s3] ss:$0 sm:$0xff]  ;;  %s2808_s17 = sshll.u32 %s3451_s13, 7  ;;  %s430_s9 = scalar_lea.vmem [#allocation12], %s2757_s7 }
  0xc5   : > { %2980 = vmatpush3.bf16.msra.mxu1 %v2979_v30  ;;  %v2764_v50 = vld [vmem:[%s4176_s4] ss:$0 sm:$0xff]  ;;  %s2623_s15 = sshll.u32 %s430_s9, 4  ;;  %s4219_s28 = sld [smem:[#allocation24_spill]]  ;;  %s4129_s15 = int_to_ptr.vmem [resolvable:$true] %s2623_s15 }
  0xc6   : > { %2981 = vmatprep.subr.bf16.mxu1 %v3367_v24  ;;  %v2765_v55 = vld [vmem:[%s4177_s5] ss:$0 sm:$0xff]  ;;  %s2610_s22 = scalar_lea.sflag [#allocation5], %s3667_s8  ;;  %s3280_s30 = scalar_lea.vmem %s4129_s15, 128 }
  0xc7   : > { %2977 = vmatpush3.bf16.msra.mxu0 %v2976_v28  ;;  %p3281_p12 = scmp.ne.s32.totalorder %s4129_s15, %s3280_s30  ;;  %p4220_p1 = scmp.ne.s32.totalorder %s4206_s27, 0 }
  0xc8   : > { %2984 = vmatprep.subr.bf16.mxu0 %v3367_v24  ;;  %s3379_s13 = smov [#allocation12]  }
  0xc9   : > { %2983 = vmatpush3.bf16.msra.mxu1 %v2982_v34  ;;  %p3282_p2 = pnand %p3281_p12, %p4220_p1  ;;  %s3284_s7 = sshll.u32 %s3379_s13, 4  ;;  %s3285_s7 = int_to_ptr.vmem [resolvable:$false] %s3284_s7 }
  0xca   : > { %2988 = vmatprep.subr.bf16.mxu1 %v3367_v24  ;;  %s3286_s6 = scalar_lea.vmem %s3285_s7, 256  ;;  %p3287_p0 = scmp.lt.s32.totalorder %s4129_s15, %s3285_s7 }
  0xcb   : > { %s4127_s23 = scalar_lea.hbm %s4219_s28, %s2808_s17  ;;  %p3283_p4 = pneg %p3282_p2 }
  0xcc   : > { %p3288_p8 = scmp.lt.s32.totalorder %s3286_s6, %s3280_s30 }
  0xce   : > { %p3289_p6 = por %p3288_p8, %p3287_p0 }
  0xd0   : > { %p3290_p10 = pnand %p3289_p6, %p3283_p4 }
 0x14d   : > { %v439_v6 = vpop.xlane.xlu0 %438 }
 0x14e   : > { %v484_v7 = vpop.xlane.xlu1 %483  ;;  %v444_v8 = vmul.f32 0.03125, %v439_v6 }
 0x14f   : > { %v485_v9 = vmul.f32 0.03125, %v484_v7  ;;  %v3373_v7 = vmov 1983009808  }
 0x150   : > { %v446_v10 = vsub.f32 %v431_v0, %v444_v8  ;;  %v698_v8 = vunpack.c.l.s4 %v3373_v7 }
 0x151   : > { %v486_v11 = vsub.f32 %v433_v1, %v485_v9  ;;  %v442_v12 = vpop.xlane.xlu0 %441  ;;  %v700_v9 = vlaneseq }
 0x152   : > { %v445_v13 = vmul.f32 0.03125, %v442_v12  ;;  %v448_v14 = vmul.f32 %v446_v10, %v446_v10  ;;  %v699_v12 = vunpack.c.0.s8 %v698_v8 }
 0x153   : > { %v487_v15 = vmul.f32 %v486_v11, %v486_v11 }
 0x154   : > { %v447_v16 = vsub.f32 %v432_v2, %v445_v13  ;;  %v450_v17 = vsel %vm436_vm0, %v448_v14, 0.0  ;;  %v701_v13 = vshrl.u32 %v700_v9, 7 }
 0x155   : > { %451 = vadd.xlane.f32.xlu1 %v450_v17  ;;  %v488_v18 = vsel %vm436_vm0, %v487_v15, 0.0 }
 0x156   : > { %v449_v19 = vmul.f32 %v447_v16, %v447_v16  ;;  %v3758_v17 = vsub.s32 %v699_v12, %v701_v13 }
 0x158   : > { %v453_v20 = vsel %vm436_vm0, %v449_v19, 0.0 }
 0x159   : > { %489 = vadd.xlane.f32.xlu1 %v488_v18  ;;  %454 = vadd.xlane.f32.xlu0 %v453_v20 }
 0x1e2   : > { %v452_v35 = vpop.xlane.xlu1 %451 }
 0x1e3   : > { %v456_v36 = vmul.f32 0.03125, %v452_v35 }
 0x1e5   : > { %v458_v37 = vadd.f32 1e-05, %v456_v36 }
 0x1e6   : > { %v490_v38 = vpop.xlane.xlu1 %489  ;;  %v455_v39 = vpop.xlane.xlu0 %454 }
 0x1e7   : > { %3114 = vrsqrt.f32 %v458_v37  ;;  %v491_v40 = vmul.f32 0.03125, %v490_v38  ;;  %v457_v41 = vmul.f32 0.03125, %v455_v39 }
 0x1e9   : > { %v492_v42 = vadd.f32 1e-05, %v491_v40  ;;  %v459_v43 = vadd.f32 1e-05, %v457_v41 }
 0x1eb   : > { %3116 = vrsqrt.f32 %v492_v42 }
 0x1ec   : > { %3118 = vrsqrt.f32 %v459_v43 }
 0x1f1   : > { %v3115_v44 = vpop.eup %3114 }
 0x1f2   : > { %v462_v46 = vmul.f32 %v3115_v44, %v446_v10  ;;  %v3374_v10 = vmov 1934713408  }
 0x1f4   : > { %v470_v48 = vmul.f32 %v2762_v45, %v462_v46 }
 0x1f5   : > { %v3117_v49 = vpop.eup %3116 }
 0x1f6   : > { %v3119_v51 = vpop.eup %3118  ;;  %v478_v52 = vadd.f32 %v2763_v47, %v470_v48  ;;  %v494_v53 = vmul.f32 %v3117_v49, %v486_v11  ;;  %v730_v11 = vunpack.c.l.s4 %v3374_v10 }
 0x1f7   : > { %v463_v54 = vmul.f32 %v3119_v51, %v447_v16 }
 0x1f8   : > { %509 = vst.msk [vmem:[#allocation2] sm:$0xff] %vm436_vm0, %v478_v52  ;;  %v501_v56 = vmul.f32 %v2764_v50, %v494_v53  ;;  %v731_v16 = vunpack.c.0.s8 %v730_v11 }
 0x1f9   : > { %v471_v57 = vmul.f32 %v2762_v45, %v463_v54 }
 0x1fa   : > { %v508_v58 = vadd.f32 %v2765_v55, %v501_v56  ;;  %v3772_v25 = vsub.s32 %v731_v16, %v701_v13 }
 0x1fb   : > { %v479_v59 = vadd.f32 %v2763_v47, %v471_v57 }
 0x1fc   : > { %511 = vst.msk [vmem:[#allocation2 + $0x10] sm:$0xff] %vm436_vm0, %v508_v58  ;;  %2870 = vmatmul.mubr.msk.f32.vlgmr.msra.gmra.mrb[0].mxu0 %vm436_vm0, %v508_v58 }
 0x1fd   : > { %510 = vst.msk [vmem:[#allocation2 + $0x8] sm:$0xff] %vm436_vm0, %v479_v59  ;;  %2895 = vmatprep.mubr.msk.f32.mxu0 %vm3368_vm1, %v3369_v33 }
 0x1ff   : > { %v512_v60 = vld [vmem:[#allocation2] sm:$0xff] }
 0x200   : > { %2881 = vmatmul.mubr.msk.f32.vlgmr.msra.gmra.mrb[0].mxu1 %vm436_vm0, %v512_v60 }
 0x201   : > { %2883 = vmatprep.mubr.msk.f32.mxu1 %vm3368_vm1, %v3369_v33 }
 0x203   : > { %v514_v62 = vld [vmem:[#allocation2 + $0x10] sm:$0xff] }
 0x204   : > { %v513_v61 = vld [vmem:[#allocation2 + $0x8] sm:$0xff] }
 0x205   : > { %2884 = vmatmul.mubr.msk.f32.gmra.mrb[2].mxu1 %vm436_vm0, %v513_v61 }
 0x206   : > { %2886 = vmatprep.mubr.msk.f32.mxu1 %vm3368_vm1, %v3369_v33 }
 0x209   : > { %2887 = vmatmul.mubr.msk.f32.gmra.mrb[4].mxu1 %vm436_vm0, %v514_v62 }
 0x20a   : > { %2904 = vmatprep.mubr.msk.f32.mxu1 %vm3368_vm1, %v3369_v33 }
 0x2cf   : > { %v3734_v63 = vpop.f32.mrb[0].mxu0 }
 0x2d0   : > { %v2871_v0 = vpop.f32.mrb[1].mxu0 }
 0x2d3   : > { %v3736_v1 = vpop.f32.mrb[0].mxu1 }
 0x2d4   : > { %843 = vrot.lane.b32.xlu1 %v3736_v1, %s3370_s25  ;;  %v2882_v2 = vpop.f32.mrb[1].mxu1  ;;  %834 = vrot.lane.b32.xlu0 %v3736_v1, %s3371_s18 }
 0x2d8   : > { %v3740_v3 = vpop.f32.mrb[2].mxu1  ;;  %852 = vrot.lane.b32.xlu0 %v3736_v1, %s3372_s19 }
 0x2d9   : > { %836 = vrot.lane.b32.xlu1 %v3740_v3, %s3371_s18  ;;  %v2885_v4 = vpop.f32.mrb[3].mxu1 }
 0x2dc   : > { %v3744_v5 = vpop.f32.mrb[4].mxu1 }
 0x2dd   : > { %845 = vrot.lane.b32.xlu1 %v3740_v3, %s3370_s25  ;;  %838 = vrot.lane.b32.xlu0 %v3744_v5, %s3371_s18  ;;  %v2888_v6 = vpop.f32.mrb[5].mxu1 }
 0x2e1   : > { %854 = vrot.lane.b32.xlu1 %v3740_v3, %s3372_s19  ;;  %856 = vrot.lane.b32.xlu0 %v3744_v5, %s3372_s19 }
 0x2e5   : > { %686 = vrot.lane.b32.xlu1 %v3734_v63, %s3371_s18  ;;  %689 = vrot.lane.b32.xlu0 %v3734_v63, %s3370_s25 }
 0x2e9   : > { %847 = vrot.lane.b32.xlu1 %v3744_v5, %s3370_s25 }
 0x2ed   : > { %692 = vrot.lane.b32.xlu1 %v3734_v63, %s3372_s19 }
 0x346   : > { %v3754_v14 = vpop.permute.xlu1 %843  ;;  %v3756_v15 = vpop.permute.xlu0 %834 }
 0x347   : > { %v861_v18 = vcombine.low %v3736_v1, %v3754_v14  ;;  %v862_v19 = vcombine.high %v3736_v1, %v3754_v14 }
 0x349   : > { %v869_v26 = vrot.slane %v861_v18, %v3758_v17  ;;  %v876_v27 = vrot.slane %v862_v19, %v3758_v17 }
 0x34a   : > { %v3764_v20 = vpop.permute.xlu0 %852 }
 0x34b   : > { %v3766_v21 = vpop.permute.xlu1 %836  ;;  %v877_v22 = vcombine.low %v3756_v15, %v3764_v20  ;;  %v878_v23 = vcombine.high %v3756_v15, %v3764_v20 }
 0x34d   : > { %v885_v28 = vrot.slane %v877_v22, %v3758_v17  ;;  %v892_v29 = vrot.slane %v878_v23, %v3758_v17 }
 0x34f   : > { %v893_v30 = vcombine.low %v869_v26, %v885_v28  ;;  %v894_v31 = vcombine.high %v869_v26, %v885_v28  ;;  %v909_v32 = vcombine.low %v876_v27, %v892_v29  ;;  %v910_v34 = vcombine.high %v876_v27, %v892_v29  ;;  %v3778_v35 = vpop.permute.xlu1 %845  ;;  %v3780_v36 = vpop.permute.xlu0 %838 }
 0x350   : > { %v929_v41 = vcombine.low %v3740_v3, %v3778_v35  ;;  %v930_v42 = vcombine.high %v3740_v3, %v3778_v35 }
 0x351   : > { %v901_v37 = vrot.slane %v893_v30, %v3772_v25  ;;  %v908_v38 = vrot.slane %v894_v31, %v3772_v25  ;;  %v917_v39 = vrot.slane %v909_v32, %v3772_v25  ;;  %v924_v40 = vrot.slane %v910_v34, %v3772_v25 }
 0x352   : > { %v937_v53 = vrot.slane %v929_v41, %v3758_v17  ;;  %v944_v54 = vrot.slane %v930_v42, %v3758_v17 }
 0x353   : > { %v1065_v43 = vcombine.low %v901_v37, %v908_v38  ;;  %v2772_v44 = vcombine.high %v901_v37, %v908_v38  ;;  %v1081_v45 = vcombine.low %v917_v39, %v924_v40  ;;  %v2773_v46 = vcombine.high %v917_v39, %v924_v40  ;;  %v3790_v47 = vpop.permute.xlu1 %854  ;;  %v3792_v48 = vpop.permute.xlu0 %856 }
 0x354   : > { %v945_v49 = vcombine.low %v3766_v21, %v3790_v47  ;;  %v946_v50 = vcombine.high %v3766_v21, %v3790_v47  ;;  %v1013_v51 = vcombine.low %v3780_v36, %v3792_v48  ;;  %v1014_v52 = vcombine.high %v3780_v36, %v3792_v48 }
 0x355   : > { %v3807_v57 = vrot.slane %v1065_v43, %v3758_v17  ;;  %v3810_v58 = vrot.slane %v2772_v44, %v3758_v17  ;;  %v3813_v59 = vrot.slane %v1081_v45, %v3758_v17  ;;  %v3816_v60 = vrot.slane %v2773_v46, %v3758_v17 }
 0x356   : > { %v953_v55 = vrot.slane %v945_v49, %v3758_v17  ;;  %v960_v56 = vrot.slane %v946_v50, %v3758_v17  ;;  %v1021_v7 = vrot.slane %v1013_v51, %v3758_v17  ;;  %v1028_v8 = vrot.slane %v1014_v52, %v3758_v17 }
 0x357   : > { %v687_v61 = vpop.permute.xlu1 %686  ;;  %v690_v6 = vpop.permute.xlu0 %689  ;;  %v1097_v13 = vcombine.low %v3807_v57, %v3810_v58  ;;  %v1113_v16 = vcombine.low %v3813_v59, %v3816_v60  ;;  %v1098_v29 = vcombine.high %v3807_v57, %v3810_v58  ;;  %v1114_v30 = vcombine.high %v3813_v59, %v3816_v60 }
 0x358   : > { %v961_v62 = vcombine.low %v937_v53, %v953_v55  ;;  %v962_v0 = vcombine.high %v937_v53, %v953_v55  ;;  %v977_v2 = vcombine.low %v944_v54, %v960_v56  ;;  %v978_v4 = vcombine.high %v944_v54, %v960_v56 }
 0x359   : > { %v695_v18 = vcombine.low %v3734_v63, %v690_v6  ;;  %v696_v19 = vcombine.high %v3734_v63, %v690_v6  ;;  %v1105_v42 = vrot.slane %v1097_v13, %v3772_v25  ;;  %v1121_v43 = vrot.slane %v1113_v16, %v3772_v25 }
 0x35a   : > { %v969_v9 = vrot.slane %v961_v62, %v3772_v25  ;;  %v976_v10 = vrot.slane %v962_v0, %v3772_v25  ;;  %v985_v11 = vrot.slane %v977_v2, %v3772_v25  ;;  %v992_v12 = vrot.slane %v978_v4, %v3772_v25 }
 0x35b   : > { %v3830_v22 = vpop.permute.xlu1 %847  ;;  %v703_v46 = vrot.slane %v695_v18, %v3758_v17  ;;  %v710_v49 = vrot.slane %v696_v19, %v3758_v17 }
 0x35c   : > { %v1133_v23 = vcombine.low %v969_v9, %v976_v10  ;;  %v2774_v26 = vcombine.high %v969_v9, %v976_v10  ;;  %v1149_v27 = vcombine.low %v985_v11, %v992_v12  ;;  %v2775_v28 = vcombine.high %v985_v11, %v992_v12 }
 0x35d   : > { %v997_v31 = vcombine.low %v3744_v5, %v3830_v22  ;;  %v998_v32 = vcombine.high %v3744_v5, %v3830_v22 }
 0x35e   : > { %v3841_v63 = vrot.slane %v1133_v23, %v3758_v17  ;;  %v3844_v34 = vrot.slane %v2774_v26, %v3758_v17  ;;  %v3847_v37 = vrot.slane %v1149_v27, %v3758_v17  ;;  %v3850_v38 = vrot.slane %v2775_v28, %v3758_v17 }
 0x35f   : > { %v1005_v39 = vrot.slane %v997_v31, %v3758_v17  ;;  %v1012_v40 = vrot.slane %v998_v32, %v3758_v17  ;;  %v693_v41 = vpop.permute.xlu1 %692 }
 0x360   : > { %v1165_v44 = vcombine.low %v3841_v63, %v3844_v34  ;;  %v1181_v45 = vcombine.low %v3847_v37, %v3850_v38  ;;  %v711_v54 = vcombine.low %v687_v61, %v693_v41  ;;  %v712_v55 = vcombine.high %v687_v61, %v693_v41 }
 0x361   : > { %v1029_v50 = vcombine.low %v1005_v39, %v1021_v7  ;;  %v1030_v51 = vcombine.high %v1005_v39, %v1021_v7  ;;  %v1045_v52 = vcombine.low %v1012_v40, %v1028_v8  ;;  %v1046_v53 = vcombine.high %v1012_v40, %v1028_v8 }
 0x362   : > { %v1173_v56 = vrot.slane %v1165_v44, %v3772_v25  ;;  %v1189_v62 = vrot.slane %v1181_v45, %v3772_v25  ;;  %v719_v9 = vrot.slane %v711_v54, %v3758_v17  ;;  %v726_v7 = vrot.slane %v712_v55, %v3758_v17 }
 0x363   : > { %v1037_v0 = vrot.slane %v1029_v50, %v3772_v25  ;;  %v1044_v2 = vrot.slane %v1030_v51, %v3772_v25  ;;  %v1053_v4 = vrot.slane %v1045_v52, %v3772_v25  ;;  %v1060_v6 = vrot.slane %v1046_v53, %v3772_v25 }
 0x364   : > { %v1197_v10 = vcombine.low %v1173_v56, %v1189_v62  ;;  %v1198_v8 = vcombine.high %v1173_v56, %v1189_v62  ;;  %v727_v16 = vcombine.low %v703_v46, %v719_v9  ;;  %v728_v18 = vcombine.high %v703_v46, %v719_v9 }
 0x365   : > { %v1201_v11 = vcombine.low %v1037_v0, %v1044_v2  ;;  %v2776_v61 = vcombine.high %v1037_v0, %v1044_v2  ;;  %v1217_v12 = vcombine.low %v1053_v4, %v1060_v6  ;;  %v2777_v13 = vcombine.high %v1053_v4, %v1060_v6 }
 0x366   : > { %v743_v19 = vcombine.low %v710_v49, %v726_v7  ;;  %v744_v23 = vcombine.high %v710_v49, %v726_v7  ;;  %v735_v32 = vrot.slane %v727_v16, %v3772_v25  ;;  %v742_v39 = vrot.slane %v728_v18, %v3772_v25 }
 0x367   : > { %v3871_v26 = vrot.slane %v1201_v11, %v3758_v17  ;;  %v3874_v27 = vrot.slane %v2776_v61, %v3758_v17  ;;  %v3877_v28 = vrot.slane %v1217_v12, %v3758_v17  ;;  %v1232_v31 = vrot.slane %v2777_v13, %v3758_v17 }
 0x368   : > { %v751_v40 = vrot.slane %v743_v19, %v3772_v25  ;;  %v758_v41 = vrot.slane %v744_v23, %v3772_v25  ;;  %v1166_v44 = vcombine.high %v3841_v63, %v3844_v34  ;;  %v1182_v45 = vcombine.high %v3847_v37, %v3850_v38 }
 0x369   : > { %v1129_v46 = vcombine.low %v1105_v42, %v1121_v43  ;;  %v1130_v49 = vcombine.high %v1105_v42, %v1121_v43  ;;  %v763_v50 = vcombine.low %v735_v32, %v742_v39  ;;  %v2770_v51 = vcombine.high %v735_v32, %v742_v39 }
 0x36a   : > { %v779_v52 = vcombine.low %v751_v40, %v758_v41  ;;  %v2771_v53 = vcombine.high %v751_v40, %v758_v41  ;;  %v1233_v55 = vcombine.low %v3871_v26, %v3874_v27  ;;  %v1249_v63 = vcombine.low %v3877_v28, %v1232_v31 }
 0x36b   : > { %v2985_v34 = vpack.c.bf16 %v1197_v10, %v1129_v46  ;;  %v2989_v56 = vpack.c.bf16 %v1198_v8, %v1130_v49  ;;  %v770_v37 = vrot.slane %v763_v50, %v3758_v17  ;;  %v778_v38 = vrot.slane %v2770_v51, %v3758_v17 }
 0x36c   : > { %v786_v42 = vrot.slane %v779_v52, %v3758_v17  ;;  %v794_v43 = vrot.slane %v2771_v53, %v3758_v17  ;;  %v1112_v62 = vrot.slane %v1098_v29, %v3772_v25  ;;  %v1128_v0 = vrot.slane %v1114_v30, %v3772_v25 }
 0x36d   : > { %2987 = vmatpush3.bf16.xpose.msk.msra.mxu0 %vm3890_vm3, %v2985_v34  ;;  %2991 = vmatpush3.bf16.xpose.msk.msra.mxu1 %vm3890_vm3, %v2989_v56  ;;  %v1180_v2 = vrot.slane %v1166_v44, %v3772_v25  ;;  %v795_v4 = vcombine.low %v770_v37, %v778_v38  ;;  %v1241_v9 = vrot.slane %v1233_v55, %v3772_v25 }
 0x36e   : > { %v811_v6 = vcombine.low %v786_v42, %v794_v43  ;;  %2893 = vmatprep.subr.mxu0 %v3369_v33  ;;  %2902 = vmatprep.subr.mxu1 %v3369_v33  ;;  %v1257_v7 = vrot.slane %v1249_v63, %v3772_v25  ;;  %v1196_v57 = vrot.slane %v1182_v45, %v3772_v25 }
 0x36f   : > { %v803_v58 = vrot.slane %v795_v4, %v3772_v25  ;;  %v1131_v59 = vcombine.low %v1112_v62, %v1128_v0  ;;  %v1132_v30 = vcombine.high %v1112_v62, %v1128_v0  ;;  %v1234_v18 = vcombine.high %v3871_v26, %v3874_v27 }
 0x370   : > { %v819_v29 = vrot.slane %v811_v6, %v3772_v25  ;;  %v1199_v60 = vcombine.low %v1180_v2, %v1196_v57  ;;  %v1200_v10 = vcombine.high %v1180_v2, %v1196_v57  ;;  %v1265_v8 = vcombine.low %v1241_v9, %v1257_v7 }
 0x371   : > { %v1266_v11 = vcombine.high %v1241_v9, %v1257_v7  ;;  %v1250_v19 = vcombine.high %v3877_v28, %v1232_v31  ;;  %v796_v23 = vcombine.high %v770_v37, %v778_v38  ;;  %v812_v32 = vcombine.high %v786_v42, %v794_v43 }
 0x372   : > { %v2993_v61 = vpack.c.bf16 %v1199_v60, %v1131_v59  ;;  %v2997_v12 = vpack.c.bf16 %v1200_v10, %v1132_v30  ;;  %v827_v13 = vcombine.low %v803_v58, %v819_v29  ;;  %v828_v16 = vcombine.high %v803_v58, %v819_v29 }
 0x373   : > { %v1248_v26 = vrot.slane %v1234_v18, %v3772_v25  ;;  %v1264_v27 = vrot.slane %v1250_v19, %v3772_v25  ;;  %v810_v28 = vrot.slane %v796_v23, %v3772_v25  ;;  %v826_v31 = vrot.slane %v812_v32, %v3772_v25 }
 0x375   : > { %2894 = vmatpush3.xpose.msk.msra.mxu0 %vm1713_vm2, %v1265_v8  ;;  %2903 = vmatpush3.xpose.msk.msra.mxu1 %vm1713_vm2, %v1266_v11  ;;  %v1267_v39 = vcombine.low %v1248_v26, %v1264_v27  ;;  %v1268_v40 = vcombine.high %v1248_v26, %v1264_v27  ;;  %v829_v41 = vcombine.low %v810_v28, %v826_v31 }
 0x376   : > { %2992 = vmatprep.subr.bf16.mxu0 %v3367_v24  ;;  %2996 = vmatprep.subr.bf16.mxu1 %v3367_v24  ;;  %v830_v44 = vcombine.high %v810_v28, %v826_v31 }
 0x378   : > { %2896 = vmatmul.mubr.msk.f32.vlgmr.msra.gmra.mrb[2].mxu0 %vm1713_vm2, %v827_v13  ;;  %2905 = vmatmul.mubr.msk.f32.vlgmr.msra.gmra.mrb[6].mxu1 %vm1713_vm2, %v828_v16 }
 0x379   : > { %2995 = vmatpush3.bf16.xpose.msk.msra.mxu0 %vm3890_vm3, %v2993_v61  ;;  %2999 = vmatpush3.bf16.xpose.msk.msra.mxu1 %vm3890_vm3, %v2997_v12 }
 0x37a   : > { %2911 = vmatprep.subr.mxu0 %v3369_v33  ;;  %2920 = vmatprep.subr.mxu1 %v3369_v33 }
 0x37b   : > { %2913 = vmatprep.mubr.msk.f32.mxu0 %vm3368_vm1, %v3369_v33  ;;  %2922 = vmatprep.mubr.msk.f32.mxu1 %vm3368_vm1, %v3369_v33 }
 0x381   : > { %2912 = vmatpush3.xpose.msk.msra.mxu0 %vm1713_vm2, %v1267_v39  ;;  %2921 = vmatpush3.xpose.msk.msra.mxu1 %vm1713_vm2, %v1268_v40 }
 0x382   : > { %3000 = vmatprep.subr.bf16.mxu1 %v3367_v24  ;;  %3006 = vmatprep.subr.bf16.mxu0 %v3367_v24 }
 0x384   : > { %2914 = vmatmul.mubr.msk.f32.vlgmr.msra.gmra.mrb[4].mxu0 %vm1713_vm2, %v829_v41  ;;  %2923 = vmatmul.mubr.msk.f32.vlgmr.msra.gmra.mrb[8].mxu1 %vm1713_vm2, %v830_v44 }
 0x385   : > { %2931 = vmatprep.mubr.msk.f32.mxu1 %vm3368_vm1, %v3369_v33  ;;  %2949 = vmatprep.mubr.msk.f32.mxu0 %vm3368_vm1, %v3369_v33 }
 0x44b   : > { %v1792_v45 = vpop.f32.mrb[2].mxu0  ;;  %v1874_v46 = vpop.f32.mrb[6].mxu1 }
 0x44c   : > { %v2897_v49 = vpop.f32.mrb[3].mxu0  ;;  %v2906_v50 = vpop.f32.mrb[7].mxu1  ;;  %v2046_v51 = vsel %vm2042_vm4, %v1874_v46, -inf  ;;  %v2043_v52 = vsel %vm2042_vm4, %v1792_v45, -inf }
 0x44d   : > { %2047 = vmax.xlane.f32.xlu1 %v2046_v51  ;;  %2044 = vmax.xlane.f32.xlu0 %v2043_v52 }
 0x457   : > { %v3956_v53 = vpop.f32.mrb[4].mxu0  ;;  %v3958_v54 = vpop.f32.mrb[8].mxu1 }
 0x458   : > { %v2915_v55 = vpop.f32.mrb[5].mxu0  ;;  %v2924_v63 = vpop.f32.mrb[9].mxu1 }
 0x45e   : > { %1269 = vrot.lane.b32.xlu1 %v3736_v1, %s3375_s20  ;;  %v2049_v1 = vsel %vm2042_vm4, %v3956_v53, -inf }
 0x462   : > { %1275 = vrot.lane.b32.xlu1 %v3756_v15, %s3375_s20  ;;  %v2052_v15 = vsel %vm2042_vm4, %v3958_v54, -inf }
 0x463   : > { %1271 = vrot.lane.b32.xlu0 %v3740_v3, %s3375_s20 }
 0x466   : > { %1277 = vrot.lane.b32.xlu1 %v3766_v21, %s3375_s20 }
 0x467   : > { %1283 = vrot.lane.b32.xlu0 %v3778_v35, %s3375_s20 }
 0x46a   : > { %1281 = vrot.lane.b32.xlu1 %v3754_v14, %s3375_s20 }
 0x46e   : > { %1287 = vrot.lane.b32.xlu1 %v3764_v20, %s3375_s20 }
 0x486   : > { %2050 = vmax.xlane.f32.xlu0 %v2049_v1 }
 0x48a   : > { %2053 = vmax.xlane.f32.xlu0 %v2052_v15 }
 0x4a0   : > { %1289 = vrot.lane.b32.xlu0 %v3790_v47, %s3375_s20 }
 0x4da   : > { %v2048_v3 = vpop.xlane.xlu1 %2047  ;;  %v2045_v21 = vpop.xlane.xlu0 %2044 }
 0x4db   : > { %v2056_v35 = vsub.f32 %v1874_v46, %v2048_v3  ;;  %v2055_v34 = vsub.f32 %v1792_v45, %v2045_v21 }
 0x4dd   : > { %v2061_v56 = vmul.f32 1.442695, %v2056_v35  ;;  %v2059_v14 = vmul.f32 1.442695, %v2055_v34 }
 0x4de   : > { %v1270_v37 = vpop.permute.xlu1 %1269  ;;  %v1272_v52 = vpop.permute.xlu0 %1271 }
 0x4df   : > { %3120 = vpow2.f32 %v2061_v56 }
 0x4e0   : > { %3122 = vpow2.f32 %v2059_v14 }
 0x4e2   : > { %v1276_v20 = vpop.permute.xlu1 %1275  ;;  %v1284_v55 = vpop.permute.xlu0 %1283 }
 0x4e3   : > { %v1373_v21 = vcombine.low %v1272_v52, %v1284_v55  ;;  %v1374_v35 = vcombine.high %v1272_v52, %v1284_v55 }
 0x4e5   : > { %v1381_v14 = vrot.slane %v1373_v21, %v3758_v17 }
 0x4e6   : > { %v3980_v38 = vpop.permute.xlu1 %1277 }
 0x4e9   : > { %v3982_v42 = vpop.eup %3120 }
 0x4ea   : > { %v3984_v43 = vpop.eup %3122  ;;  %v1282_v62 = vpop.permute.xlu1 %1281  ;;  %v2070_v47 = vsel %vm2042_vm4, %v3982_v42, 0.0 }
 0x4eb   : > { %2071 = vadd.xlane.f32.xlu1 %v2070_v47  ;;  %v2067_v0 = vsel %vm2042_vm4, %v3984_v43, 0.0  ;;  %v1305_v2 = vcombine.low %v1270_v37, %v1282_v62  ;;  %v1306_v4 = vcombine.high %v1270_v37, %v1282_v62 }
 0x4ec   : > { %2068 = vadd.xlane.f32.xlu0 %v2067_v0 }
 0x4ed   : > { %v1313_v57 = vrot.slane %v1305_v2, %v3758_v17  ;;  %v1320_v58 = vrot.slane %v1306_v4, %v3758_v17 }
 0x4ee   : > { %v1288_v6 = vpop.permute.xlu1 %1287 }
 0x4ef   : > { %v1321_v9 = vcombine.low %v1276_v20, %v1288_v6  ;;  %v1322_v7 = vcombine.high %v1276_v20, %v1288_v6 }
 0x4f1   : > { %v1329_v29 = vrot.slane %v1321_v9, %v3758_v17  ;;  %v1336_v59 = vrot.slane %v1322_v7, %v3758_v17 }
 0x4f3   : > { %v1337_v60 = vcombine.low %v1313_v57, %v1329_v29  ;;  %v1338_v30 = vcombine.high %v1313_v57, %v1329_v29  ;;  %v1353_v10 = vcombine.low %v1320_v58, %v1336_v59  ;;  %v1354_v8 = vcombine.high %v1320_v58, %v1336_v59 }
 0x4f5   : > { %v1345_v11 = vrot.slane %v1337_v60, %v3772_v25  ;;  %v1352_v61 = vrot.slane %v1338_v30, %v3772_v25  ;;  %v1361_v12 = vrot.slane %v1353_v10, %v3772_v25  ;;  %v1368_v13 = vrot.slane %v1354_v8, %v3772_v25 }
 0x4f7   : > { %v1509_v16 = vcombine.low %v1345_v11, %v1352_v61  ;;  %v2778_v18 = vcombine.high %v1345_v11, %v1352_v61  ;;  %v1525_v19 = vcombine.low %v1361_v12, %v1368_v13  ;;  %v2779_v23 = vcombine.high %v1361_v12, %v1368_v13 }
 0x4f9   : > { %v1516_v32 = vrot.slane %v1509_v16, %v3758_v17  ;;  %v1524_v26 = vrot.slane %v2778_v18, %v3758_v17  ;;  %v1532_v27 = vrot.slane %v1525_v19, %v3758_v17  ;;  %v1540_v28 = vrot.slane %v2779_v23, %v3758_v17 }
 0x4fb   : > { %v1541_v31 = vcombine.low %v1516_v32, %v1524_v26  ;;  %v1557_v39 = vcombine.low %v1532_v27, %v1540_v28  ;;  %v1542_v40 = vcombine.high %v1516_v32, %v1524_v26  ;;  %v1558_v41 = vcombine.high %v1532_v27, %v1540_v28 }
 0x4fd   : > { %v4003_v44 = vrot.slane %v1541_v31, %v3772_v25  ;;  %v4006_v45 = vrot.slane %v1557_v39, %v3772_v25  ;;  %v4009_v46 = vrot.slane %v1542_v40, %v3772_v25  ;;  %v4012_v49 = vrot.slane %v1558_v41, %v3772_v25 }
 0x4ff   : > { %v1574_v50 = vcombine.high %v4003_v44, %v4006_v45  ;;  %v1576_v51 = vcombine.high %v4009_v46, %v4012_v49  ;;  %v1573_v26 = vcombine.low %v4003_v44, %v4006_v45  ;;  %v1575_v27 = vcombine.low %v4009_v46, %v4012_v49 }
 0x502   : > { %1273 = vrot.lane.b32.xlu0 %v3744_v5, %s3375_s20 }
 0x506   : > { %1279 = vrot.lane.b32.xlu0 %v3780_v36, %s3375_s20 }
 0x50a   : > { %1285 = vrot.lane.b32.xlu0 %v3830_v22, %s3375_s20 }
 0x50e   : > { %1291 = vrot.lane.b32.xlu0 %v3792_v48, %s3375_s20  ;;  %v1388_v48 = vrot.slane %v1374_v35, %v3758_v17 }
 0x513   : > { %v2051_v63 = vpop.xlane.xlu0 %2050 }
 0x514   : > { %v2057_v1 = vsub.f32 %v3956_v53, %v2051_v63 }
 0x516   : > { %v2063_v5 = vmul.f32 1.442695, %v2057_v1 }
 0x517   : > { %v2054_v15 = vpop.xlane.xlu0 %2053 }
 0x518   : > { %v2058_v3 = vsub.f32 %v3958_v54, %v2054_v15 }
 0x51a   : > { %v2065_v34 = vmul.f32 1.442695, %v2058_v3 }
 0x51b   : > { %v1290_v56 = vpop.permute.xlu0 %1289 }
 0x51c   : > { %3124 = vpow2.f32 %v2065_v34  ;;  %v1389_v36 = vcombine.low %v3980_v38, %v1290_v56  ;;  %v1390_v22 = vcombine.high %v3980_v38, %v1290_v56 }
 0x51d   : > { %3126 = vpow2.f32 %v2063_v5 }
 0x51e   : > { %v1397_v53 = vrot.slane %v1389_v36, %v3758_v17  ;;  %v1404_v37 = vrot.slane %v1390_v22, %v3758_v17 }
 0x520   : > { %v1405_v54 = vcombine.low %v1381_v14, %v1397_v53  ;;  %v1406_v20 = vcombine.high %v1381_v14, %v1397_v53  ;;  %v1421_v62 = vcombine.low %v1388_v48, %v1404_v37  ;;  %v1422_v47 = vcombine.high %v1388_v48, %v1404_v37 }
 0x522   : > { %v1413_v0 = vrot.slane %v1405_v54, %v3772_v25  ;;  %v1420_v2 = vrot.slane %v1406_v20, %v3772_v25  ;;  %v1429_v4 = vrot.slane %v1421_v62, %v3772_v25  ;;  %v1436_v38 = vrot.slane %v1422_v47, %v3772_v25 }
 0x524   : > { %v1577_v6 = vcombine.low %v1413_v0, %v1420_v2  ;;  %v2780_v9 = vcombine.high %v1413_v0, %v1420_v2  ;;  %v1593_v7 = vcombine.low %v1429_v4, %v1436_v38  ;;  %v2781_v57 = vcombine.high %v1429_v4, %v1436_v38 }
 0x526   : > { %v4038_v58 = vpop.eup %3124  ;;  %v1584_v29 = vrot.slane %v1577_v6, %v3758_v17  ;;  %v1592_v59 = vrot.slane %v2780_v9, %v3758_v17  ;;  %v1600_v60 = vrot.slane %v1593_v7, %v3758_v17  ;;  %v1608_v30 = vrot.slane %v2781_v57, %v3758_v17 }
 0x527   : > { %v2076_v10 = vsel %vm2042_vm4, %v4038_v58, 0.0  ;;  %v4046_v8 = vpop.eup %3126 }
 0x528   : > { %2077 = vadd.xlane.f32.xlu1 %v2076_v10  ;;  %v1609_v11 = vcombine.low %v1584_v29, %v1592_v59  ;;  %v1625_v61 = vcombine.low %v1600_v60, %v1608_v30  ;;  %v1610_v12 = vcombine.high %v1584_v29, %v1592_v59  ;;  %v1626_v13 = vcombine.high %v1600_v60, %v1608_v30 }
 0x529   : > { %v2073_v32 = vsel %vm2042_vm4, %v4046_v8, 0.0 }
 0x52a   : > { %v1617_v16 = vrot.slane %v1609_v11, %v3772_v25  ;;  %v1633_v18 = vrot.slane %v1625_v61, %v3772_v25  ;;  %v1624_v19 = vrot.slane %v1610_v12, %v3772_v25  ;;  %v1640_v23 = vrot.slane %v1626_v13, %v3772_v25 }
 0x52c   : > { %v1641_v28 = vcombine.low %v1617_v16, %v1633_v18  ;;  %v1643_v31 = vcombine.low %v1624_v19, %v1640_v23  ;;  %v1642_v39 = vcombine.high %v1617_v16, %v1633_v18  ;;  %v1644_v40 = vcombine.high %v1624_v19, %v1640_v23 }
 0x52d   : > { %2074 = vadd.xlane.f32.xlu0 %v2073_v32 }
 0x52e   : > { %v3001_v41 = vpack.c.bf16 %v1641_v28, %v1573_v26  ;;  %v3007_v52 = vpack.c.bf16 %v1643_v31, %v1575_v27  ;;  %v3004_v55 = vpack.c.bf16 %v1642_v39, %v1574_v50  ;;  %v3010_v63 = vpack.c.bf16 %v1644_v40, %v1576_v51  ;;  %v2531_v39 = vld [vmem:[#allocation11] sm:$0xff]  ;;  %v2532_v40 = vld [vmem:[#allocation11 + $0x8] sm:$0xff] }
 0x530   : > { %3002 = vmatpush3.bf16.msra.mxu1 %v3001_v41  ;;  %3008 = vmatpush3.bf16.msra.mxu0 %v3007_v52  ;;  %v3013_v41 = vpack.c.bf16 %v2532_v40, %v2531_v39 }
 0x531   : > { %2929 = vmatprep.subr.mxu1 %v3369_v33  ;;  %2947 = vmatprep.subr.mxu0 %v3369_v33 }
 0x578   : > { %v2072_v48 = vpop.xlane.xlu1 %2071 }
 0x579   : > { %v2069_v1 = vpop.xlane.xlu0 %2068 }
 0x57a   : > { %3128 = vrcp.f32 %v2069_v1 }
 0x57b   : > { %3130 = vrcp.f32 %v2072_v48 }
 0x57d   : > { %v1274_v15 = vpop.permute.xlu0 %1273 }
 0x581   : > { %v1280_v3 = vpop.permute.xlu0 %1279 }
 0x584   : > { %v3129_v60 = vpop.eup %3128 }
 0x585   : > { %v1286_v21 = vpop.permute.xlu0 %1285  ;;  %v2083_v16 = vmul.f32 %v3129_v60, %v3984_v43  ;;  %v3131_v18 = vpop.eup %3130 }
 0x586   : > { %v1441_v35 = vcombine.low %v1274_v15, %v1286_v21  ;;  %v1442_v5 = vcombine.high %v1274_v15, %v1286_v21  ;;  %v2084_v23 = vmul.f32 %v3131_v18, %v3982_v42 }
 0x588   : > { %v1449_v45 = vrot.slane %v1441_v35, %v3758_v17  ;;  %v1456_v46 = vrot.slane %v1442_v5, %v3758_v17 }
 0x589   : > { %v1292_v34 = vpop.permute.xlu0 %1291 }
 0x58a   : > { %v1457_v56 = vcombine.low %v1280_v3, %v1292_v34  ;;  %v1458_v44 = vcombine.high %v1280_v3, %v1292_v34 }
 0x58c   : > { %v1465_v49 = vrot.slane %v1457_v56, %v3758_v17  ;;  %v1472_v50 = vrot.slane %v1458_v44, %v3758_v17 }
 0x58e   : > { %v1473_v51 = vcombine.low %v1449_v45, %v1465_v49  ;;  %v1474_v36 = vcombine.high %v1449_v45, %v1465_v49  ;;  %v1489_v22 = vcombine.low %v1456_v46, %v1472_v50  ;;  %v1490_v14 = vcombine.high %v1456_v46, %v1472_v50 }
 0x590   : > { %v1481_v53 = vrot.slane %v1473_v51, %v3772_v25  ;;  %v1488_v37 = vrot.slane %v1474_v36, %v3772_v25  ;;  %v1497_v54 = vrot.slane %v1489_v22, %v3772_v25  ;;  %v1504_v20 = vrot.slane %v1490_v14, %v3772_v25  ;;  %v2533_v51 = vld [vmem:[#allocation11 + $0x10] sm:$0xff]  ;;  %v2534_v36 = vld [vmem:[#allocation11 + $0x18] sm:$0xff] }
 0x592   : > { %v1645_v62 = vcombine.low %v1481_v53, %v1488_v37  ;;  %v2782_v47 = vcombine.high %v1481_v53, %v1488_v37  ;;  %v1661_v0 = vcombine.low %v1497_v54, %v1504_v20  ;;  %v2783_v2 = vcombine.high %v1497_v54, %v1504_v20 }
 0x593   : > { %v3016_v37 = vpack.c.bf16 %v2534_v36, %v2533_v51 }
 0x594   : > { %v1652_v4 = vrot.slane %v1645_v62, %v3758_v17  ;;  %v1660_v38 = vrot.slane %v2782_v47, %v3758_v17  ;;  %v1668_v6 = vrot.slane %v1661_v0, %v3758_v17  ;;  %v1676_v9 = vrot.slane %v2783_v2, %v3758_v17 }
 0x596   : > { %v1677_v7 = vcombine.low %v1652_v4, %v1660_v38  ;;  %v1693_v57 = vcombine.low %v1668_v6, %v1676_v9  ;;  %v1678_v29 = vcombine.high %v1652_v4, %v1660_v38  ;;  %v1694_v59 = vcombine.high %v1668_v6, %v1676_v9 }
 0x598   : > { %v1685_v30 = vrot.slane %v1677_v7, %v3772_v25  ;;  %v1701_v10 = vrot.slane %v1693_v57, %v3772_v25  ;;  %v1692_v11 = vrot.slane %v1678_v29, %v3772_v25  ;;  %v1708_v61 = vrot.slane %v1694_v59, %v3772_v25 }
 0x59a   : > { %v1709_v12 = vcombine.low %v1685_v30, %v1701_v10  ;;  %v1711_v13 = vcombine.low %v1692_v11, %v1708_v61  ;;  %v1710_v19 = vcombine.high %v1685_v30, %v1701_v10  ;;  %v1712_v43 = vcombine.high %v1692_v11, %v1708_v61 }
 0x59c   : > { %2930 = vmatpush3.msra.mxu1 %v1709_v12  ;;  %2948 = vmatpush3.msra.mxu0 %v1711_v13 }
 0x59d   : > { %2932 = vmatmul.mubr.msk.f32.vlgmr.msra.gmra.mrb[10].mxu1 %vm2042_vm4, %v2083_v16  ;;  %3003 = vmatprep.subr.bf16.mxu1 %v3367_v24 }
 0x59e   : > { %3005 = vmatpush3.bf16.msra.mxu1 %v3004_v55  ;;  %2940 = vmatprep.mubr.msk.f32.mxu1 %vm3368_vm1, %v3369_v33 }
 0x59f   : > { %2938 = vmatprep.subr.mxu1 %v3369_v33  ;;  %3012 = vmatprep.subr.bf16.mxu0 %v3367_v24 }
 0x5a2   : > { %2939 = vmatpush3.msra.mxu1 %v1710_v19 }
 0x5a3   : > { %2941 = vmatmul.mubr.msk.f32.vlgmr.msra.gmra.mrb[12].mxu1 %vm2042_vm4, %v2084_v23  ;;  %3009 = vmatprep.subr.bf16.mxu1 %v3367_v24 }
 0x5a4   : > { %3011 = vmatpush3.bf16.msra.mxu1 %v3010_v63  ;;  %2958 = vmatprep.mubr.msk.f32.mxu1 %vm3368_vm1, %v3369_v33 }
 0x5a5   : > { %2956 = vmatprep.subr.mxu1 %v3369_v33 }
 0x5a8   : > { %2957 = vmatpush3.msra.mxu1 %v1712_v43 }
 0x5b5   : > { %v2078_v32 = vpop.xlane.xlu1 %2077 }
 0x5b6   : > { %3132 = vrcp.f32 %v2078_v32 }
 0x5ba   : > { %v2075_v26 = vpop.xlane.xlu0 %2074 }
 0x5bb   : > { %3134 = vrcp.f32 %v2075_v26 }
 0x5c0   : > { %v3133_v27 = vpop.eup %3132 }
 0x5c1   : > { %v2086_v42 = vmul.f32 %v3133_v27, %v4038_v58 }
 0x5c3   : > { %2959 = vmatmul.mubr.msk.f32.vlgmr.msra.gmra.mrb[14].mxu1 %vm2042_vm4, %v2086_v42 }
 0x5c5   : > { %v3135_v28 = vpop.eup %3134 }
 0x5c6   : > { %v2085_v31 = vmul.f32 %v3135_v28, %v4046_v8 }
 0x5c8   : > { %2950 = vmatmul.mubr.msk.f32.vlgmr.msra.gmra.mrb[6].mxu0 %vm2042_vm4, %v2085_v31 }
 0x5c9   : > { %2969 = vmatprep.mubr.msk.f32.mxu0 %vm3368_vm1, %v3369_v33  ;;  %3014 = vmatpush3.bf16.msra.mxu0 %v3013_v41 }
 0x5ca   : > { %3015 = vmatprep.subr.bf16.mxu0 %v3367_v24 }
 0x5cd   : > { %3017 = vmatpush3.bf16.msra.mxu0 %v3016_v37 }
 0x670   : > { %v2156_v52 = vpop.f32.mrb[10].mxu1 }
 0x671   : > { %v2933_v55 = vpop.f32.mrb[11].mxu1 }
 0x676   : > { %v2229_v63 = vpop.f32.mrb[12].mxu1 }
 0x677   : > { %v2942_v58 = vpop.f32.mrb[13].mxu1 }
 0x696   : > { %v2375_v1 = vpop.f32.mrb[14].mxu1 }
 0x697   : > { %v2395_v15 = vcombine.low %v2229_v63, %v2375_v1  ;;  %v2396_v3 = vcombine.high %v2229_v63, %v2375_v1  ;;  %v2960_v21 = vpop.f32.mrb[15].mxu1 }
 0x699   : > { %v2403_v33 = vrot.slane %v2395_v15, %v3758_v17  ;;  %v2410_v56 = vrot.slane %v2396_v3, %v3758_v17 }
 0x69b   : > { %v2302_v8 = vpop.f32.mrb[6].mxu0 }
 0x69c   : > { %v2379_v35 = vcombine.low %v2156_v52, %v2302_v8  ;;  %v2380_v5 = vcombine.high %v2156_v52, %v2302_v8  ;;  %v2951_v34 = vpop.f32.mrb[7].mxu0 }
 0x69e   : > { %v2387_v44 = vrot.slane %v2379_v35, %v3758_v17  ;;  %v2394_v24 = vrot.slane %v2380_v5, %v3758_v17 }
 0x6a0   : > { %v2411_v45 = vcombine.low %v2387_v44, %v2403_v33  ;;  %v2412_v46 = vcombine.high %v2387_v44, %v2403_v33  ;;  %v2427_v49 = vcombine.low %v2394_v24, %v2410_v56  ;;  %v2428_v50 = vcombine.high %v2394_v24, %v2410_v56 }
 0x6a2   : > { %v2419_v22 = vrot.slane %v2411_v45, %v3772_v25  ;;  %v2426_v14 = vrot.slane %v2412_v46, %v3772_v25  ;;  %v2435_v48 = vrot.slane %v2427_v49, %v3772_v25  ;;  %v2442_v53 = vrot.slane %v2428_v50, %v3772_v25 }
 0x6a4   : > { %v2447_v54 = vcombine.low %v2419_v22, %v2426_v14  ;;  %v2804_v20 = vcombine.high %v2419_v22, %v2426_v14  ;;  %v2463_v62 = vcombine.low %v2435_v48, %v2442_v53  ;;  %v2805_v47 = vcombine.high %v2435_v48, %v2442_v53 }
 0x6a6   : > { %v2454_v0 = vrot.slane %v2447_v54, %v3758_v17  ;;  %v2462_v2 = vrot.slane %v2804_v20, %v3758_v17  ;;  %v2470_v4 = vrot.slane %v2463_v62, %v3758_v17  ;;  %v2478_v38 = vrot.slane %v2805_v47, %v3758_v17 }
 0x6a8   : > { %v2480_v6 = vcombine.high %v2454_v0, %v2462_v2  ;;  %v2496_v9 = vcombine.high %v2470_v4, %v2478_v38  ;;  %v2479_v7 = vcombine.low %v2454_v0, %v2462_v2  ;;  %v2495_v57 = vcombine.low %v2470_v4, %v2478_v38 }
 0x6aa   : > { %v2494_v29 = vrot.slane %v2480_v6, %v3772_v25  ;;  %v2510_v59 = vrot.slane %v2496_v9, %v3772_v25  ;;  %v2487_v60 = vrot.slane %v2479_v7, %v3772_v25  ;;  %v2503_v30 = vrot.slane %v2495_v57, %v3772_v25 }
 0x6ac   : > { %v2513_v10 = vcombine.low %v2494_v29, %v2510_v59  ;;  %v2512_v11 = vcombine.high %v2487_v60, %v2503_v30  ;;  %v2514_v61 = vcombine.high %v2494_v29, %v2510_v59  ;;  %v2511_v12 = vcombine.low %v2487_v60, %v2503_v30 }
 0x6ae   : > { %2520 = vrot.lane.b32.xlu0 %v2513_v10, %s3376_s24  ;;  %2516 = vrot.lane.b32.xlu1 %v2512_v11, %s3377_s21 }
 0x6b2   : > { %2524 = vrot.lane.b32.xlu1 %v2514_v61, %s3378_s0 }
 0x720   : > { %v2517_v17 = vpop.permute.xlu1 %2516  ;;  %v2521_v13 = vpop.permute.xlu0 %2520 }
 0x721   : > { %v2527_v16 = vsel %vm1713_vm2, %v2511_v12, %v2517_v17 }
 0x722   : > { %v2529_v18 = vsel %vm2528_vm5, %v2527_v16, %v2521_v13 }
 0x724   : > { %v2525_v25 = vpop.permute.xlu1 %2524 }
 0x725   : > { %v2530_v19 = vsel %vm2042_vm4, %v2529_v18, %v2525_v25 }
 0x726   : > { %2970 = vmatmul.mubr.msk.f32.vlgmr.msra.gmra.mrb[8].mxu0 %vm436_vm0, %v2530_v19 }
 0x7f9   : > { %v2604_v23 = vpop.f32.mrb[8].mxu0 }
 0x7fa   : > { %2608 = vst.msk [vmem:[%s430_s9] sm:$0xff] %vm436_vm0, %v2604_v23  ;;  %v2971_v43 = vpop.f32.mrb[9].mxu0 }
 0x7fb   : > { %3293 = shalt.err (!%p3290_p10)
}
 0x7fc   : > { %s3294_s8 = scalar_lea.hbm %s4127_s23, 128  ;;  %s3298_s19 = scalar_lea.hbm %s4219_s28, 256 }
 0x7fd   : > { %p3295_p13 = scmp.ne.s32.totalorder %s4127_s23, %s3294_s8  ;;  %p3299_p11 = scmp.lt.u32.totalorder %s4127_s23, %s4219_s28 }
 0x7fe   : > { %p3300_p3 = scmp.lt.u32.totalorder %s3298_s19, %s3294_s8  ;;  %p3302_p12 = scmp.lt.u32.totalorder %s3294_s8, %s4127_s23 }
 0x7ff   : > { %p3296_p9 = pnand %p3295_p13, %p4220_p1 }
 0x800   : > { %p3301_p7 = por %p3300_p3, %p3299_p11 }
 0x801   : > { %p3297_p5 = pneg %p3296_p9 }
 0x802   : > { %p3303_p2 = por %p3302_p12, %p3301_p7 }
 0x804   : > { %p3304_p4 = pnand %p3303_p2, %p3297_p5 }
 0x806   : > { %3307 = shalt.err (!%p3304_p4)
}
 0x807   : > { %3034 = dma.vmem_to_hbm [thread:$0]  (%p4220_p1), %s4129_s15, 128, %s4127_s23, %s2610_s22  }
 0x808 PF: > { %s4221_s21 = sld [smem:[#allocation18_spill]]  ;;  %s4222_s0 = sld [smem:[#allocation19_spill]] }
 0x809   : > { %p4224_p8 = scmp.ge.s32.totalorder %s3358_s12, 2 }
 0x80e   : > { %s2635_s17 = sand.u32 1, %s4221_s21   ;;  %p4223_p0 = scmp.ne.s32.totalorder %s4222_s0, 0 }
 0x80f   : > { %s2636_s9 = scalar_lea.sflag [#allocation5], %s2635_s17 }
 0x810   : > { %p3054_p6 = pnand %p4224_p8, %p4223_p0 }
 0x812   : > { %3341 = dma.done.wait (!%p3054_p6), %s2636_s9, 128  }
 0x813   : > { %3343 = vsyncadd (!%p3054_p6), %s2636_s9, 4294967168  ;;  %p26_p10 = scmp.ge.s32.totalorder %s3570_s14, 4   ;;  %s4225_s30 = smov %s3350_s10 }
 0x814   : > { %s4226_s10 = smov %s3354_s11  ;;  %s4227_s11 = smov %s3580_s16 }
 0x815   : > { %s4228_s12 = smov %s3570_s14  ;;  %28 = sbr.rel (!%p26_p10) target bundleno = 14 (0xe), region = 126 }
 0x81c   :  { %2641 = vsyncpa [#allocation4], 1 }
 0x81d   :  { %2643 = vsyncpa [#allocation4 + $0x1], 1 }
 0x81e   :  { %2644 = vsyncpa [#allocation7], 1 }
 0x81f   :  { %2646 = vsyncpa [#allocation7 + $0x1], 1 }
 0x820   :  { %2647 = vsyncpa [#allocation10], 1 }
 0x821   :  { %2648 = vsyncpa [#allocation5], 1 }
 0x822   :  { %2650 = vsyncpa [#allocation5 + $0x1], 1 }

</bundles_post_ra>
